<compile_context>
chip_gen: v6e
topology: v6e:2x2x1
jax: 0.10.0
libtpu: 0.0.40
codegen_flags: <defaults>
</compile_context>

<pallas_src>
import functools

import jax
import jax.numpy as jnp
from jax import lax
from jax.experimental import pallas as pl
from jax.experimental.pallas import tpu as pltpu


def _round_up(x, m):
    return (x + m - 1) // m * m


def _shift_kernel(shift_ref, x_ref, o_ref, *, nb, pad, wrap_rows):
    """One grid step: crop `nb` shifted (H, W) windows from raw x blocks."""
    b = pl.program_id(0)
    c, h, w = x_ref.shape[1], x_ref.shape[2], x_ref.shape[3]
    n_shift = 2 * pad + 1

    def per_image(i, carry):
        n = b * nb + i                       # global image index
        sx = shift_ref[2 * n]                # width shift  (grid[..., 0])
        sy = shift_ref[2 * n + 1]            # height shift (grid[..., 1])
        xi = x_ref[i]                        # (C, H, W)

        # ---- row window: padded rows [sy, sy+H) of the replicate-padded,
        #      height-tiled image, from <=2 static sublane slices of xi. ----
        def row_case(s, a):
            if s <= pad:                     # (pad-s) clamped top rows, then rows 0..H-1-t
                t = pad - s
                if t == 0:
                    return a
                top = jnp.broadcast_to(a[:, 0:1, :], (c, t, w))
                return jnp.concatenate([top, a[:, : h - t, :]], axis=1)
            else:                            # rows (s-pad)..H-1, then wrap/clamp rows
                k = s - pad
                if wrap_rows:                # height-tiled image wraps to its own top
                    tail = a[:, :k, :]
                else:                        # square input: bottom replicate pad
                    tail = jnp.broadcast_to(a[:, h - 1 : h, :], (c, k, w))
                return jnp.concatenate([a[:, k:, :], tail], axis=1)

        rows = lax.switch(
            sy, [functools.partial(row_case, s) for s in range(n_shift)], xi)

        # ---- column window: out[..., j] = rows[..., clamp(j+sx-pad, 0, W-1)],
        #      replicate-pad folded in, from <=2 static lane slices. ----
        def col_case(s, a):
            if s <= pad:
                t = pad - s
                if t == 0:
                    return a
                left = jnp.broadcast_to(a[:, :, 0:1], (c, h, t))
                return jnp.concatenate([left, a[:, :, : w - t]], axis=2)
            else:
                k = s - pad
                right = jnp.broadcast_to(a[:, :, w - 1 : w], (c, h, k))
                return jnp.concatenate([a[:, :, k:], right], axis=2)

        out = lax.switch(
            sx, [functools.partial(col_case, s) for s in range(n_shift)], rows)

        o_ref[i] = out.astype(o_ref.dtype)
        return carry

    lax.fori_loop(0, nb, per_image, 0)


def _pick_batch_block(n, dbuf_bytes_per_image, budget_bytes):
    nb = max(1, min(n, budget_bytes // max(1, dbuf_bytes_per_image)))
    nb = min(nb, max(1, n // 2))     # keep grid >= 2 so megacore (v7x) splits
    while n % nb:
        nb -= 1
    return int(nb)


def random_shifts_aug(x, shifts, pad=4):
    """x: (N, C, H, W) with W % H == 0; shifts: (N, 2) int32 in [0, 2*pad]."""
    n, c, h, w = x.shape
    assert w % h == 0, "width must be an integer multiple of height"
    assert pad <= h
    shifts_flat = shifts.astype(jnp.int32).reshape(-1)          # (2N,) -> SMEM

    # VMEM tile footprint with lane/sublane padding (dtype-aware packing).
    itemsize = jnp.dtype(x.dtype).itemsize
    sub = max(8, 32 // itemsize)                  # 8 f32 / 16 bf16 / 32 int8
    tile_bytes = c * _round_up(h, sub) * _round_up(w, 128) * itemsize
    dbuf_per_image = 2 * (tile_bytes + tile_bytes)     # double-buffered in+out
    interm_bytes = 4 * c * _round_up(h, sub) * _round_up(w, 128) * max(itemsize, 4)

    try:
        phys_vmem = int(pltpu.get_tpu_info().vmem_capacity_bytes)
    except Exception:
        phys_vmem = 64 << 20                      # conservative (v7x-sized)

    budget = max(dbuf_per_image, int(phys_vmem * 0.55) - interm_bytes)
    nb = _pick_batch_block(n, dbuf_per_image, budget)
    vmem_limit = int(min(int(phys_vmem * 0.95),
                         nb * dbuf_per_image + interm_bytes + (8 << 20)))

    kernel = functools.partial(_shift_kernel, nb=nb, pad=pad, wrap_rows=(w > h))
    return pl.pallas_call(
        kernel,
        out_shape=jax.ShapeDtypeStruct((n, c, h, w), x.dtype),
        grid_spec=pltpu.PrefetchScalarGridSpec(
            num_scalar_prefetch=1,                # shifts land in SMEM
            grid=(n // nb,),
            in_specs=[pl.BlockSpec((nb, c, h, w), lambda b, s: (b, 0, 0, 0))],
            out_specs=pl.BlockSpec((nb, c, h, w), lambda b, s: (b, 0, 0, 0)),
        ),
        compiler_params=pltpu.CompilerParams(
            dimension_semantics=("parallel",),
            vmem_limit_bytes=vmem_limit),
    )(shifts_flat, x)


if __name__ == "__main__":
    key = jax.random.PRNGKey(0)
    kx, ks = jax.random.split(key)

    # Small shapes with the module's aspect ratio (real module: N=128, C=9,
    # H=84, W=420 = 5*H, pad=4).
    N, C, H, W = 2, 4, 16, 80
    pad = 4
    x = jax.random.normal(kx, (N, C, H, W), dtype=jnp.float32)
    # torch.randint(0, 2*pad+1, (n,1,1,2)): [..., 0] = sx (width), [..., 1] = sy.
    shifts = jax.random.randint(ks, (N, 2), 0, 2 * pad + 1, dtype=jnp.int32)

    out = jax.block_until_ready(random_shifts_aug(x, shifts, pad=pad))

    # Pure-JAX reference mirroring the module: tile height to square,
    # replicate-pad, integer crop at (sy, sx), keep the first H rows.
    rep = W // H
    x_sq = jnp.concatenate([x] * rep, axis=2)                       # (N,C,W,W)
    xpad = jnp.pad(x_sq, ((0, 0), (0, 0), (pad, pad), (pad, pad)), mode="edge")
    ri = jnp.arange(H)[None, :] + shifts[:, 1:2]                    # (N, H)
    ci = jnp.arange(W)[None, :] + shifts[:, 0:1]                    # (N, W)
    ref = xpad[jnp.arange(N)[:, None, None, None],
               jnp.arange(C)[None, :, None, None],
               ri[:, None, :, None],
               ci[:, None, None, :]]

    assert out.shape == (N, C, H, W)
    assert out.dtype == x.dtype
    assert jnp.allclose(out, ref), float(jnp.max(jnp.abs(out - ref)))
    print("KERNEL_OK")
</pallas_src>

<mosaic_0001>
module attributes {stable_mosaic.version = 11 : i64} {
  func.func @_shift_kernel(%arg0: i32, %arg1: memref<4xi32, #tpu.memory_space<smem>>, %arg2: memref<1x4x16x80xf32, #tpu.memory_space<vmem>>, %arg3: memref<1x4x16x80xf32, #tpu.memory_space<vmem>>) attributes {dimension_semantics = [#tpu.dimension_semantics<parallel>], iteration_bounds = array<i64: 2>, scalar_prefetch = 1 : i64, scratch_operands = 0 : i64, tpu.core_type = #tpu.core_type<tc>, window_params = [{transform_indices = @transform_0, window_bounds = array<i64: 1, 4, 16, 80>}, {transform_indices = @transform_1, window_bounds = array<i64: 1, 4, 16, 80>}]} {
    %c0_i32 = arith.constant 0 : i32
    %c1_i32 = arith.constant 1 : i32
    %0 = arith.muli %arg0, %c1_i32 : i32
    %1 = arith.addi %0, %c0_i32 : i32
    %c2_i32 = arith.constant 2 : i32
    %2 = arith.muli %c2_i32, %1 : i32
    %3 = arith.index_cast %2 : i32 to index
    %4 = memref.load %arg1[%3] : memref<4xi32, #tpu.memory_space<smem>>
    %c2_i32_0 = arith.constant 2 : i32
    %5 = arith.muli %c2_i32_0, %1 : i32
    %c1_i32_1 = arith.constant 1 : i32
    %6 = arith.addi %5, %c1_i32_1 : i32
    %7 = arith.index_cast %6 : i32 to index
    %8 = memref.load %arg1[%7] : memref<4xi32, #tpu.memory_space<smem>>
    %9 = arith.index_cast %c0_i32 : i32 to index
    %c0 = arith.constant 0 : index
    %c0_2 = arith.constant 0 : index
    %c0_3 = arith.constant 0 : index
    %10 = vector.load %arg2[%9, %c0, %c0_2, %c0_3] : memref<1x4x16x80xf32, #tpu.memory_space<vmem>>, vector<1x4x16x80xf32>
    %11 = vector.shape_cast %10 : vector<1x4x16x80xf32> to vector<4x16x80xf32>
    %c0_i32_4 = arith.constant 0 : i32
    %c8_i32 = arith.constant 8 : i32
    %12 = arith.maxsi %8, %c0_i32_4 : i32
    %13 = arith.minsi %12, %c8_i32 : i32
    %c0_i32_5 = arith.constant 0 : i32
    %14 = arith.cmpi ne, %13, %c0_i32_5 : i32
    %15 = scf.if %14 -> (vector<4x16x80xf32>) {
      %c1_i32_13 = arith.constant 1 : i32
      %24 = arith.subi %13, %c1_i32_13 : i32
      %c0_i32_14 = arith.constant 0 : i32
      %25 = arith.cmpi ne, %24, %c0_i32_14 : i32
      %26 = scf.if %25 -> (vector<4x16x80xf32>) {
        %c1_i32_15 = arith.constant 1 : i32
        %27 = arith.subi %24, %c1_i32_15 : i32
        %c0_i32_16 = arith.constant 0 : i32
        %28 = arith.cmpi ne, %27, %c0_i32_16 : i32
        %29 = scf.if %28 -> (vector<4x16x80xf32>) {
          %c1_i32_17 = arith.constant 1 : i32
          %30 = arith.subi %27, %c1_i32_17 : i32
          %c0_i32_18 = arith.constant 0 : i32
          %31 = arith.cmpi ne, %30, %c0_i32_18 : i32
          %32 = scf.if %31 -> (vector<4x16x80xf32>) {
            %c1_i32_19 = arith.constant 1 : i32
            %33 = arith.subi %30, %c1_i32_19 : i32
            %c0_i32_20 = arith.constant 0 : i32
            %34 = arith.cmpi ne, %33, %c0_i32_20 : i32
            %35 = scf.if %34 -> (vector<4x16x80xf32>) {
              %c1_i32_21 = arith.constant 1 : i32
              %36 = arith.subi %33, %c1_i32_21 : i32
              %c0_i32_22 = arith.constant 0 : i32
              %37 = arith.cmpi ne, %36, %c0_i32_22 : i32
              %38 = scf.if %37 -> (vector<4x16x80xf32>) {
                %c1_i32_23 = arith.constant 1 : i32
                %39 = arith.subi %36, %c1_i32_23 : i32
                %c0_i32_24 = arith.constant 0 : i32
                %40 = arith.cmpi ne, %39, %c0_i32_24 : i32
                %41 = scf.if %40 -> (vector<4x16x80xf32>) {
                  %c1_i32_25 = arith.constant 1 : i32
                  %42 = arith.subi %39, %c1_i32_25 : i32
                  %c0_i32_26 = arith.constant 0 : i32
                  %43 = arith.cmpi ne, %42, %c0_i32_26 : i32
                  %44 = scf.if %43 -> (vector<4x16x80xf32>) {
                    %45 = vector.extract_strided_slice %11 {offsets = [0, 0, 0], sizes = [4, 4, 80], strides = [1, 1, 1]} : vector<4x16x80xf32> to vector<4x4x80xf32>
                    %46 = vector.extract_strided_slice %11 {offsets = [0, 4, 0], sizes = [4, 12, 80], strides = [1, 1, 1]} : vector<4x16x80xf32> to vector<4x12x80xf32>
                    %47 = tpu.concatenate %46, %45 in 1 : vector<4x12x80xf32>, vector<4x4x80xf32> -> vector<4x16x80xf32>
                    scf.yield %47 : vector<4x16x80xf32>
                  } else {
                    %45 = vector.extract_strided_slice %11 {offsets = [0, 0, 0], sizes = [4, 3, 80], strides = [1, 1, 1]} : vector<4x16x80xf32> to vector<4x3x80xf32>
                    %46 = vector.extract_strided_slice %11 {offsets = [0, 3, 0], sizes = [4, 13, 80], strides = [1, 1, 1]} : vector<4x16x80xf32> to vector<4x13x80xf32>
                    %47 = tpu.concatenate %46, %45 in 1 : vector<4x13x80xf32>, vector<4x3x80xf32> -> vector<4x16x80xf32>
                    scf.yield %47 : vector<4x16x80xf32>
                  }
                  scf.yield %44 : vector<4x16x80xf32>
                } else {
                  %42 = vector.extract_strided_slice %11 {offsets = [0, 0, 0], sizes = [4, 2, 80], strides = [1, 1, 1]} : vector<4x16x80xf32> to vector<4x2x80xf32>
                  %43 = vector.extract_strided_slice %11 {offsets = [0, 2, 0], sizes = [4, 14, 80], strides = [1, 1, 1]} : vector<4x16x80xf32> to vector<4x14x80xf32>
                  %44 = tpu.concatenate %43, %42 in 1 : vector<4x14x80xf32>, vector<4x2x80xf32> -> vector<4x16x80xf32>
                  scf.yield %44 : vector<4x16x80xf32>
                }
                scf.yield %41 : vector<4x16x80xf32>
              } else {
                %39 = vector.extract_strided_slice %11 {offsets = [0, 0, 0], sizes = [4, 1, 80], strides = [1, 1, 1]} : vector<4x16x80xf32> to vector<4x1x80xf32>
                %40 = vector.extract_strided_slice %11 {offsets = [0, 1, 0], sizes = [4, 15, 80], strides = [1, 1, 1]} : vector<4x16x80xf32> to vector<4x15x80xf32>
                %41 = tpu.concatenate %40, %39 in 1 : vector<4x15x80xf32>, vector<4x1x80xf32> -> vector<4x16x80xf32>
                scf.yield %41 : vector<4x16x80xf32>
              }
              scf.yield %38 : vector<4x16x80xf32>
            } else {
              scf.yield %11 : vector<4x16x80xf32>
            }
            scf.yield %35 : vector<4x16x80xf32>
          } else {
            %33 = vector.extract_strided_slice %11 {offsets = [0, 0, 0], sizes = [4, 1, 80], strides = [1, 1, 1]} : vector<4x16x80xf32> to vector<4x1x80xf32>
            %34 = vector.extract_strided_slice %11 {offsets = [0, 0, 0], sizes = [4, 15, 80], strides = [1, 1, 1]} : vector<4x16x80xf32> to vector<4x15x80xf32>
            %35 = tpu.concatenate %33, %34 in 1 : vector<4x1x80xf32>, vector<4x15x80xf32> -> vector<4x16x80xf32>
            scf.yield %35 : vector<4x16x80xf32>
          }
          scf.yield %32 : vector<4x16x80xf32>
        } else {
          %30 = vector.extract_strided_slice %11 {offsets = [0, 0, 0], sizes = [4, 1, 80], strides = [1, 1, 1]} : vector<4x16x80xf32> to vector<4x1x80xf32>
          %31 = vector.shape_cast %30 : vector<4x1x80xf32> to vector<4x1x80xf32>
          %32 = vector.broadcast %31 : vector<4x1x80xf32> to vector<4x2x80xf32>
          %33 = vector.extract_strided_slice %11 {offsets = [0, 0, 0], sizes = [4, 14, 80], strides = [1, 1, 1]} : vector<4x16x80xf32> to vector<4x14x80xf32>
          %34 = tpu.concatenate %32, %33 in 1 : vector<4x2x80xf32>, vector<4x14x80xf32> -> vector<4x16x80xf32>
          scf.yield %34 : vector<4x16x80xf32>
        }
        scf.yield %29 : vector<4x16x80xf32>
      } else {
        %27 = vector.extract_strided_slice %11 {offsets = [0, 0, 0], sizes = [4, 1, 80], strides = [1, 1, 1]} : vector<4x16x80xf32> to vector<4x1x80xf32>
        %28 = vector.shape_cast %27 : vector<4x1x80xf32> to vector<4x1x80xf32>
        %29 = vector.broadcast %28 : vector<4x1x80xf32> to vector<4x3x80xf32>
        %30 = vector.extract_strided_slice %11 {offsets = [0, 0, 0], sizes = [4, 13, 80], strides = [1, 1, 1]} : vector<4x16x80xf32> to vector<4x13x80xf32>
        %31 = tpu.concatenate %29, %30 in 1 : vector<4x3x80xf32>, vector<4x13x80xf32> -> vector<4x16x80xf32>
        scf.yield %31 : vector<4x16x80xf32>
      }
      scf.yield %26 : vector<4x16x80xf32>
    } else {
      %24 = vector.extract_strided_slice %11 {offsets = [0, 0, 0], sizes = [4, 1, 80], strides = [1, 1, 1]} : vector<4x16x80xf32> to vector<4x1x80xf32>
      %25 = vector.shape_cast %24 : vector<4x1x80xf32> to vector<4x1x80xf32>
      %26 = vector.broadcast %25 : vector<4x1x80xf32> to vector<4x4x80xf32>
      %27 = vector.extract_strided_slice %11 {offsets = [0, 0, 0], sizes = [4, 12, 80], strides = [1, 1, 1]} : vector<4x16x80xf32> to vector<4x12x80xf32>
      %28 = tpu.concatenate %26, %27 in 1 : vector<4x4x80xf32>, vector<4x12x80xf32> -> vector<4x16x80xf32>
      scf.yield %28 : vector<4x16x80xf32>
    }
    %c0_i32_6 = arith.constant 0 : i32
    %c8_i32_7 = arith.constant 8 : i32
    %16 = arith.maxsi %4, %c0_i32_6 : i32
    %17 = arith.minsi %16, %c8_i32_7 : i32
    %c0_i32_8 = arith.constant 0 : i32
    %18 = arith.cmpi ne, %17, %c0_i32_8 : i32
    %19 = scf.if %18 -> (vector<4x16x80xf32>) {
      %c1_i32_13 = arith.constant 1 : i32
      %24 = arith.subi %17, %c1_i32_13 : i32
      %c0_i32_14 = arith.constant 0 : i32
      %25 = arith.cmpi ne, %24, %c0_i32_14 : i32
      %26 = scf.if %25 -> (vector<4x16x80xf32>) {
        %c1_i32_15 = arith.constant 1 : i32
        %27 = arith.subi %24, %c1_i32_15 : i32
        %c0_i32_16 = arith.constant 0 : i32
        %28 = arith.cmpi ne, %27, %c0_i32_16 : i32
        %29 = scf.if %28 -> (vector<4x16x80xf32>) {
          %c1_i32_17 = arith.constant 1 : i32
          %30 = arith.subi %27, %c1_i32_17 : i32
          %c0_i32_18 = arith.constant 0 : i32
          %31 = arith.cmpi ne, %30, %c0_i32_18 : i32
          %32 = scf.if %31 -> (vector<4x16x80xf32>) {
            %c1_i32_19 = arith.constant 1 : i32
            %33 = arith.subi %30, %c1_i32_19 : i32
            %c0_i32_20 = arith.constant 0 : i32
            %34 = arith.cmpi ne, %33, %c0_i32_20 : i32
            %35 = scf.if %34 -> (vector<4x16x80xf32>) {
              %c1_i32_21 = arith.constant 1 : i32
              %36 = arith.subi %33, %c1_i32_21 : i32
              %c0_i32_22 = arith.constant 0 : i32
              %37 = arith.cmpi ne, %36, %c0_i32_22 : i32
              %38 = scf.if %37 -> (vector<4x16x80xf32>) {
                %c1_i32_23 = arith.constant 1 : i32
                %39 = arith.subi %36, %c1_i32_23 : i32
                %c0_i32_24 = arith.constant 0 : i32
                %40 = arith.cmpi ne, %39, %c0_i32_24 : i32
                %41 = scf.if %40 -> (vector<4x16x80xf32>) {
                  %c1_i32_25 = arith.constant 1 : i32
                  %42 = arith.subi %39, %c1_i32_25 : i32
                  %c0_i32_26 = arith.constant 0 : i32
                  %43 = arith.cmpi ne, %42, %c0_i32_26 : i32
                  %44 = scf.if %43 -> (vector<4x16x80xf32>) {
                    %45 = vector.extract_strided_slice %15 {offsets = [0, 0, 79], sizes = [4, 16, 1], strides = [1, 1, 1]} : vector<4x16x80xf32> to vector<4x16x1xf32>
                    %46 = vector.shape_cast %45 : vector<4x16x1xf32> to vector<4x16x1xf32>
                    %47 = vector.broadcast %46 : vector<4x16x1xf32> to vector<4x16x4xf32>
                    %48 = vector.extract_strided_slice %15 {offsets = [0, 0, 4], sizes = [4, 16, 76], strides = [1, 1, 1]} : vector<4x16x80xf32> to vector<4x16x76xf32>
                    %49 = tpu.concatenate %48, %47 in 2 : vector<4x16x76xf32>, vector<4x16x4xf32> -> vector<4x16x80xf32>
                    scf.yield %49 : vector<4x16x80xf32>
                  } else {
                    %45 = vector.extract_strided_slice %15 {offsets = [0, 0, 79], sizes = [4, 16, 1], strides = [1, 1, 1]} : vector<4x16x80xf32> to vector<4x16x1xf32>
                    %46 = vector.shape_cast %45 : vector<4x16x1xf32> to vector<4x16x1xf32>
                    %47 = vector.broadcast %46 : vector<4x16x1xf32> to vector<4x16x3xf32>
                    %48 = vector.extract_strided_slice %15 {offsets = [0, 0, 3], sizes = [4, 16, 77], strides = [1, 1, 1]} : vector<4x16x80xf32> to vector<4x16x77xf32>
                    %49 = tpu.concatenate %48, %47 in 2 : vector<4x16x77xf32>, vector<4x16x3xf32> -> vector<4x16x80xf32>
                    scf.yield %49 : vector<4x16x80xf32>
                  }
                  scf.yield %44 : vector<4x16x80xf32>
                } else {
                  %42 = vector.extract_strided_slice %15 {offsets = [0, 0, 79], sizes = [4, 16, 1], strides = [1, 1, 1]} : vector<4x16x80xf32> to vector<4x16x1xf32>
                  %43 = vector.shape_cast %42 : vector<4x16x1xf32> to vector<4x16x1xf32>
                  %44 = vector.broadcast %43 : vector<4x16x1xf32> to vector<4x16x2xf32>
                  %45 = vector.extract_strided_slice %15 {offsets = [0, 0, 2], sizes = [4, 16, 78], strides = [1, 1, 1]} : vector<4x16x80xf32> to vector<4x16x78xf32>
                  %46 = tpu.concatenate %45, %44 in 2 : vector<4x16x78xf32>, vector<4x16x2xf32> -> vector<4x16x80xf32>
                  scf.yield %46 : vector<4x16x80xf32>
                }
                scf.yield %41 : vector<4x16x80xf32>
              } else {
                %39 = vector.extract_strided_slice %15 {offsets = [0, 0, 79], sizes = [4, 16, 1], strides = [1, 1, 1]} : vector<4x16x80xf32> to vector<4x16x1xf32>
                %40 = vector.extract_strided_slice %15 {offsets = [0, 0, 1], sizes = [4, 16, 79], strides = [1, 1, 1]} : vector<4x16x80xf32> to vector<4x16x79xf32>
                %41 = tpu.concatenate %40, %39 in 2 : vector<4x16x79xf32>, vector<4x16x1xf32> -> vector<4x16x80xf32>
                scf.yield %41 : vector<4x16x80xf32>
              }
              scf.yield %38 : vector<4x16x80xf32>
            } else {
              scf.yield %15 : vector<4x16x80xf32>
            }
            scf.yield %35 : vector<4x16x80xf32>
          } else {
            %33 = vector.extract_strided_slice %15 {offsets = [0, 0, 0], sizes = [4, 16, 1], strides = [1, 1, 1]} : vector<4x16x80xf32> to vector<4x16x1xf32>
            %34 = vector.extract_strided_slice %15 {offsets = [0, 0, 0], sizes = [4, 16, 79], strides = [1, 1, 1]} : vector<4x16x80xf32> to vector<4x16x79xf32>
            %35 = tpu.concatenate %33, %34 in 2 : vector<4x16x1xf32>, vector<4x16x79xf32> -> vector<4x16x80xf32>
            scf.yield %35 : vector<4x16x80xf32>
          }
          scf.yield %32 : vector<4x16x80xf32>
        } else {
          %30 = vector.extract_strided_slice %15 {offsets = [0, 0, 0], sizes = [4, 16, 1], strides = [1, 1, 1]} : vector<4x16x80xf32> to vector<4x16x1xf32>
          %31 = vector.shape_cast %30 : vector<4x16x1xf32> to vector<4x16x1xf32>
          %32 = vector.broadcast %31 : vector<4x16x1xf32> to vector<4x16x2xf32>
          %33 = vector.extract_strided_slice %15 {offsets = [0, 0, 0], sizes = [4, 16, 78], strides = [1, 1, 1]} : vector<4x16x80xf32> to vector<4x16x78xf32>
          %34 = tpu.concatenate %32, %33 in 2 : vector<4x16x2xf32>, vector<4x16x78xf32> -> vector<4x16x80xf32>
          scf.yield %34 : vector<4x16x80xf32>
        }
        scf.yield %29 : vector<4x16x80xf32>
      } else {
        %27 = vector.extract_strided_slice %15 {offsets = [0, 0, 0], sizes = [4, 16, 1], strides = [1, 1, 1]} : vector<4x16x80xf32> to vector<4x16x1xf32>
        %28 = vector.shape_cast %27 : vector<4x16x1xf32> to vector<4x16x1xf32>
        %29 = vector.broadcast %28 : vector<4x16x1xf32> to vector<4x16x3xf32>
        %30 = vector.extract_strided_slice %15 {offsets = [0, 0, 0], sizes = [4, 16, 77], strides = [1, 1, 1]} : vector<4x16x80xf32> to vector<4x16x77xf32>
        %31 = tpu.concatenate %29, %30 in 2 : vector<4x16x3xf32>, vector<4x16x77xf32> -> vector<4x16x80xf32>
        scf.yield %31 : vector<4x16x80xf32>
      }
      scf.yield %26 : vector<4x16x80xf32>
    } else {
      %24 = vector.extract_strided_slice %15 {offsets = [0, 0, 0], sizes = [4, 16, 1], strides = [1, 1, 1]} : vector<4x16x80xf32> to vector<4x16x1xf32>
      %25 = vector.shape_cast %24 : vector<4x16x1xf32> to vector<4x16x1xf32>
      %26 = vector.broadcast %25 : vector<4x16x1xf32> to vector<4x16x4xf32>
      %27 = vector.extract_strided_slice %15 {offsets = [0, 0, 0], sizes = [4, 16, 76], strides = [1, 1, 1]} : vector<4x16x80xf32> to vector<4x16x76xf32>
      %28 = tpu.concatenate %26, %27 in 2 : vector<4x16x4xf32>, vector<4x16x76xf32> -> vector<4x16x80xf32>
      scf.yield %28 : vector<4x16x80xf32>
    }
    %20 = arith.index_cast %c0_i32 : i32 to index
    %c0_9 = arith.constant 0 : index
    %c0_10 = arith.constant 0 : index
    %c0_11 = arith.constant 0 : index
    %21 = vector.load %arg3[%20, %c0_9, %c0_10, %c0_11] : memref<1x4x16x80xf32, #tpu.memory_space<vmem>>, vector<1x4x16x80xf32>
    %22 = vector.shape_cast %21 : vector<1x4x16x80xf32> to vector<4x16x80xf32>
    %23 = vector.shape_cast %19 : vector<4x16x80xf32> to vector<1x4x16x80xf32>
    tpu.vector_store %arg3[%20, %c0_9, %c0_10, %c0_11], %23 {strides = array<i32>} : memref<1x4x16x80xf32, #tpu.memory_space<vmem>>, vector<1x4x16x80xf32>,
    %c1_i32_12 = arith.constant 1 : i32
    return
  }
  func.func @transform_0(%arg0: i32, %arg1: memref<4xi32, #tpu.memory_space<smem>>) -> (i32, i32, i32, i32) {
    %c0_i32 = arith.constant 0 : i32
    %c0_i32_0 = arith.constant 0 : i32
    %c0_i32_1 = arith.constant 0 : i32
    %c0_i32_2 = arith.constant 0 : i32
    return %arg0, %c0_i32, %c0_i32_0, %c0_i32_1 : i32, i32, i32, i32
  }
  func.func @transform_1(%arg0: i32, %arg1: memref<4xi32, #tpu.memory_space<smem>>) -> (i32, i32, i32, i32) {
    %c0_i32 = arith.constant 0 : i32
    %c0_i32_0 = arith.constant 0 : i32
    %c0_i32_1 = arith.constant 0 : i32
    %c0_i32_2 = arith.constant 0 : i32
    return %arg0, %c0_i32, %c0_i32_0, %c0_i32_1 : i32, i32, i32, i32
  }
}

</mosaic_0001>

<bundles_post_ra>
// kernel: tpu_custom_call.1
= control target key start
LH: loop header
LB: loop body
LE: loop exit
PB: predicated region body
PF: predicated region fallthrough
CT: control target
= control target key end

     0   :  { %s4790_s9 = smov [#allocation3]   ;;  %s6329_s0 = inlined_call_operand.hbm [shape: s32[4], index: 0, kind: input, shape index: {}]   ;;  %s6330_s1 = inlined_call_operand.hbm [shape: f32[2,4,16,80], index: 1, kind: input, shape index: {}]   ;;  %s6331_s2 = inlined_call_operand.hbm [shape: f32[2,4,16,80], index: 2, kind: output, shape index: {}]  }
   0x1   :  { %8 = dma.hbm_to_smem %s6329_s0, 16, %s4790_s9, [#allocation2] }
   0x2   :  { %4092 = dma.done.wait [#allocation2], 16 }
   0x3   :  { %4093 = vsyncadd [#allocation2], 4294967280 }
   0x4   :  { %10 = sfence }
   0x5   :  { %11 = vsyncpa [#allocation5], 0 }
   0x6   :  { %13 = vsyncpa [#allocation5 + $0x1], 0 }
   0x7   :  { %14 = vsyncpa [#allocation6], 0 }
   0x8   :  { %16 = vsyncpa [#allocation6 + $0x1], 0  ;;  %s4829_s12 = smov 0   ;;  %s4831_s13 = smov 0  }
   0x9   :  { %s4833_s14 = smov 0   ;;  %s4835_s15 = smov 0  }
   0xa LB: > { %s4850_s0 = sadd.s32 4294967295, %s4116_s15   ;;  %s1486_s16 = sadd.s32 4294967294, %s4116_s15   ;;  %s4116_s15 = sphi %s4835_s15, %s6401_s15   ;;  %s4112_s14 = sphi %s4833_s14, %s6400_s14   ;;  %s4108_s13 = sphi %s4831_s13, %s6399_s13   ;;  %s4104_s12 = sphi %s4829_s12, %s6398_s12  }
   0xb   : > { %s4854_s17 = sadd.s32 1, %s4116_s15   ;;  %s29_s18 = sadd.s32 1, %s4112_s14 }
   0xc   : > { %s26_s19 = ssub.s32 %s4116_s15, %s4854_s17  ;;  %p36_p0 = scmp.ne.s32.totalorder %s4112_s14, %s4108_s13 }
   0xd   : > { %p27_p1 = scmp.eq.s32.totalorder %s26_s19, 0  ;;  %p37_p2 = scmp.eq.s32.totalorder %s4116_s15, 0 }
   0xe   : > { %p42_p3 = scmp.ne.s32.totalorder %s4108_s13, %s4104_s12  ;;  %p43_p4 = scmp.eq.s32.totalorder %s4850_s0, 0 }
   0xf   : > { %s4866_s20 = scalar_select %p27_p1, %s4112_s14, %s29_s18  }
  0x10   : > { %p4868_p5 = por %p37_p2, %p36_p0  ;;  %p4872_p6 = por %p43_p4, %p42_p3 }
  0x11   : > { %p66_p7 = scmp.eq.s32.totalorder %s4850_s0, 1  ;;  %p72_p8 = scmp.eq.s32.totalorder %s1486_s16, 1 }
  0x12   : > { %s6335_s22 = scalar_select %p4872_p6, 1, 0 }
  0x13   : > { %p1922_p10 = scmp.lt.s32.totalorder %s4116_s15, 2  ;;  %p4879_p11 = por %p66_p7, %p36_p0 }
  0x14   : > { %p4883_p12 = por %p72_p8, %p42_p3  ;;  %s92_s25 = sand.u32 1, %s4112_s14  }
  0x15   : > { %s6336_s23 = scalar_select %p4879_p11, 1, 0 }
  0x16   : > { %s6337_s24 = scalar_select %p4883_p12, 1, 0 }
  0x17   : > { %s1541_s26 = sshll.u32 %s4116_s15, 10  ;;  %s1489_s27 = sshll.u32 %s92_s25, 6 }
  0x18   : > { %s4892_s30 = scalar_lea.hbm %s6330_s1, %s1541_s26  ;;  %s96_s3 = scalar_lea.vmem [#allocation4], %s1489_s27 }
  0x19   : > { %s103_s4 = sshll.u32 %s96_s3, 4  ;;  %p4896_p13 = pnand %p1922_p10, %p4868_p5  ;;  %s4900_s4 = int_to_ptr.vmem [resolvable:$true] %s103_s4 }
  0x1a   : > { %s4902_s6 = scalar_lea.sflag [#allocation5], %s92_s25  ;;  %s3350_s7 = scalar_lea.hbm %s4892_s30, 1024 }
  0x1b   : > { %p3351_p0 = scmp.ne.s32.totalorder %s4892_s30, %s3350_s7  ;;  %p3352_p1 = pneg %p4896_p13 }
  0x1c   : > { %s3355_s10 = scalar_lea.hbm %s6330_s1, 2048  ;;  %p3356_p4 = scmp.lt.s32.totalorder %s4892_s30, %s6330_s1 }
  0x1d   : > { %p3353_p2 = pnand %p3352_p1, %p3351_p0  ;;  %p3357_p5 = scmp.lt.s32.totalorder %s3355_s10, %s3350_s7 }
  0x1f   : > { %p3354_p3 = pneg %p3353_p2  ;;  %p3358_p7 = por %p3357_p5, %p3356_p4 }
  0x21   : > { %p3359_p8 = pnand %p3358_p7, %p3354_p3 }
  0x23   : > { %3362 = shalt.err (!%p3359_p8)
}
  0x24   : > { %s3363_s18 = scalar_lea.vmem %s4900_s4, 1024  ;;  %s4791_s19 = smov [#allocation4]  }
  0x25   : > { %p3364_p10 = scmp.ne.s32.totalorder %s4900_s4, %s3363_s18  ;;  %s3368_s21 = sshll.u32 %s4791_s19, 4  ;;  %s3369_s21 = int_to_ptr.vmem [resolvable:$false] %s3368_s21 }
  0x26   : > { %s3370_s25 = scalar_lea.vmem %s3369_s21, 2048  ;;  %p3371_p2 = scmp.lt.s32.totalorder %s4900_s4, %s3369_s21 }
  0x27   : > { %p3366_p9 = pnand %p3364_p10, %p3352_p1  ;;  %p3372_p12 = scmp.lt.s32.totalorder %s3370_s25, %s3363_s18 }
  0x29   : > { %p3367_p0 = pneg %p3366_p9  ;;  %p3373_p11 = por %p3372_p12, %p3371_p2 }
  0x2b   : > { %p3374_p6 = pnand %p3373_p11, %p3367_p0 }
  0x2d   : > { %3377 = shalt.err (!%p3374_p6)
}
  0x2e   : > { %s4792_s26 = smov 128   ;;  %s4793_s27 = smov 8  }
  0x2f   : > { %1884 = dma.hbm_to_vmem [thread:$0]  (!%p4896_p13), %s4892_s30, 1024, %s4900_s4, %s4902_s6, %s4792_s26, %s4792_s26, %s4793_s27  }
  0x30   : > { %p1492_p9 = scmp.ge.s32.totalorder %s4116_s15, 1  ;;  %p111_p1 = scmp.lt.s32.totalorder %s4116_s15, 3 }
  0x32   : > { %p112_p3 = pnand %p1492_p9, %p111_p1 }
  0x33   : > { %s4926_s28 = sand.u32 (!%p112_p3), 1, %s4108_s13   ;;  %p6339_p6 = scmp.ne.s32.totalorder (!%p112_p3), %s6335_s22, 0 }
  0x34   : > { %115 = sbr.rel (%p112_p3) target bundleno = 1475 (0x5c3), region = 24  ;;  %s1493_s29 = sshll.u32 (!%p112_p3), %s4926_s28, 6 }
  0x35   : > { %s118_s3 = scalar_lea.sflag (!%p112_p3), [#allocation5], %s4926_s28  ;;  %s121_s7 = scalar_lea.vmem (!%p112_p3), [#allocation4], %s1493_s29 }
  0x39   : > { %4095 = dma.done.wait (%p6339_p6), %s118_s3, 1024  }
  0x3a   : > { %4097 = vsyncadd (%p6339_p6), %s118_s3, 4294966272  ;;  %s1495_s30 = sshll.u32 %s4850_s0, 1  ;;  %v4937_v0 = vld [vmem:[%s121_s7] sm:$0xff]  ;;  %v4939_v1 = vld [vmem:[%s121_s7 + $0x8] sm:$0xff]  ;;  %s4955_s22 = scalar_lea.vmem [#allocation7], %s1493_s29  ;;  %v4958_v8 = vmov 0  }
  0x3b   : > { %s4935_s4 = sld [smem:[#allocation3 + %s1495_s30]]  ;;  %s142_s5 = sadd.s32 1, %s1495_s30  ;;  %v4941_v2 = vld [vmem:[%s121_s7 + $0x10] sm:$0xff]  ;;  %v4943_v3 = vld [vmem:[%s121_s7 + $0x18] sm:$0xff]  ;;  %v4945_v4 = vld [vmem:[%s121_s7 + $0x20] sm:$0xff]  ;;  %v4960_v9 = vmov 0  }
  0x3c   : > { %s143_s6 = sld [smem:[#allocation3 + %s142_s5]]  ;;  %v4947_v5 = vld [vmem:[%s121_s7 + $0x28] sm:$0xff]  ;;  %v4949_v6 = vld [vmem:[%s121_s7 + $0x30] sm:$0xff]  ;;  %v4951_v7 = vld [vmem:[%s121_s7 + $0x38] sm:$0xff]  ;;  %v4962_v10 = vmov 0   ;;  %v4964_v11 = vmov 0  }
  0x3d   : > { %v4966_v12 = vmov 0   ;;  %v4968_v13 = vmov 0   ;;  %v4970_v14 = vmov 0   ;;  %v4972_v15 = vmov 0  }
  0x42   : > { %p152_p11 = scmp.gt.s32.totalorder %s143_s6, 0  ;;  %p1496_p12 = scmp.lt.s32.totalorder %s143_s6, 8 }
  0x44   : > { %s6403_s6 = smov (!%p152_p11, %s143_s6), 0 }
  0x45   : > { %s6405_s6 = smov (!%p1496_p12, %s6403_s6), 8 }
  0x46   : > { %p1501_p13 = scmp.eq.s32.totalorder %s6405_s6, 0 }
  0x47   : > { %s1502_s8 = sadd.s32 (!%p1501_p13), 4294967295, %s6405_s6 }
  0x48   : > { %159 = sbr.rel (%p1501_p13) target bundleno = 167 (0xa7), region = 32  ;;  %p4977_p4 = scmp.eq.s32.totalorder (!%p1501_p13), %s1502_s8, 0 }
  0x4d   : > { %v4981_v16 = vmov 0   ;;  %v4983_v17 = vmov 0   ;;  %v4985_v18 = vmov 0   ;;  %v4987_v19 = vmov 0   ;;  %164 = sbr.rel (%p4977_p4) target bundleno = 157 (0x9d), region = 36  ;;  %s1504_s10 = sadd.s32 (!%p4977_p4), 4294967294, %s6405_s6 }
  0x4e   : > { %v4989_v20 = vmov 0   ;;  %v4991_v21 = vmov 0   ;;  %v4993_v22 = vmov 0   ;;  %v4995_v23 = vmov 0   ;;  %p5000_p5 = scmp.eq.s32.totalorder (!%p4977_p4), %s1504_s10, 0 }
  0x52   : > { %v5004_v24 = vmov 0   ;;  %v5006_v25 = vmov 0   ;;  %v5008_v26 = vmov 0   ;;  %v5010_v27 = vmov 0   ;;  %169 = sbr.rel (%p5000_p5) target bundleno = 147 (0x93), region = 40  ;;  %s1506_s16 = sadd.s32 (!%p5000_p5), 4294967293, %s6405_s6 }
  0x53   : > { %v5012_v28 = vmov 0   ;;  %v5014_v29 = vmov 0   ;;  %v5016_v30 = vmov 0   ;;  %v5018_v31 = vmov 0   ;;  %p5023_p7 = scmp.eq.s32.totalorder (!%p5000_p5), %s1506_s16, 0 }
  0x57   : > { %v5027_v32 = vmov 0   ;;  %v5029_v33 = vmov 0   ;;  %v5031_v34 = vmov 0   ;;  %v5033_v35 = vmov 0   ;;  %174 = sbr.rel (%p5023_p7) target bundleno = 139 (0x8b), region = 44  ;;  %s1508_s19 = sadd.s32 (!%p5023_p7), 4294967292, %s6405_s6 }
  0x58   : > { %v5035_v36 = vmov 0   ;;  %v5037_v37 = vmov 0   ;;  %v5039_v38 = vmov 0   ;;  %v5041_v39 = vmov 0   ;;  %p5046_p8 = scmp.eq.s32.totalorder (!%p5023_p7), %s1508_s19, 0 }
  0x5c   : > { %v5050_v40 = vmov 0   ;;  %v5052_v41 = vmov 0   ;;  %v5054_v42 = vmov 0   ;;  %v5056_v43 = vmov 0   ;;  %179 = sbr.rel (%p5046_p8) target bundleno = 133 (0x85), region = 48  ;;  %s1510_s25 = sadd.s32 (!%p5046_p8), 4294967291, %s6405_s6 }
  0x5d   : > { %v5058_v44 = vmov 0   ;;  %v5060_v45 = vmov 0   ;;  %v5062_v46 = vmov 0   ;;  %v5064_v47 = vmov 0   ;;  %p5069_p10 = scmp.eq.s32.totalorder (!%p5046_p8), %s1510_s25, 0 }
  0x61   : > { %v5073_v48 = vmov 0   ;;  %v5075_v49 = vmov 0   ;;  %v5077_v50 = vmov 0   ;;  %v5079_v51 = vmov 0   ;;  %184 = sbr.rel (%p5069_p10) target bundleno = 126 (0x7e), region = 52  ;;  %s1512_s27 = sadd.s32 (!%p5069_p10), 4294967290, %s6405_s6 }
  0x62   : > { %v5081_v52 = vmov 0   ;;  %v5083_v53 = vmov 0   ;;  %v5085_v54 = vmov 0   ;;  %v5087_v55 = vmov 0   ;;  %s1514_s29 = sadd.s32 (!%p5069_p10), 4294967289, %s6405_s6  ;;  %p5102_p0 = scmp.ne.s32.totalorder (!%p5069_p10), %s1512_s27, 0 }
  0x63   : > { %p5106_p2 = scmp.ne.s32.totalorder (!%p5069_p10), %s1514_s29, 0  ;;  %p5113_p9 = scmp.eq.s32.totalorder (!%p5069_p10), %s1514_s29, 0 }
  0x64   : > { %p5143_p1 = scmp.eq.s32.totalorder (!%p5069_p10), %s1512_s27, 0 }
  0x66   : > { %vm203_vm0 = vcmask 1043456   ;;  %v204_v56 = vrot.slane %v4937_v0, 4  ;;  %v205_v57 = vrot.slane %v4939_v1, 4  ;;  %v207_v58 = vrot.slane %v4941_v2, 4  ;;  %s1550_s5 = scalar_select %p5106_p2, 1, 0 }
  0x67   : > { %v208_v59 = vrot.slane %v4943_v3, 4  ;;  %v210_v60 = vrot.slane %v4945_v4, 4  ;;  %v211_v61 = vrot.slane %v4947_v5, 4  ;;  %v213_v62 = vrot.slane %v4949_v6, 4  ;;  %s1886_s8 = scalar_select %p5102_p0, 1, 0 }
  0x68   : > { %v206_v63 = vsel %vm203_vm0, %v204_v56, %v205_v57  ;;  %v214_v8 = vrot.slane %v4951_v7, 4  ;;  %v228_v9 = vsel %vm203_vm0, %v205_v57, %v204_v56  ;;  %vm251_vm1 = vcmask 1044480   ;;  %s1583_s10 = scalar_select %p5113_p9, 1, 0 }
  0x69   : > { %v209_v10 = vsel %vm203_vm0, %v207_v58, %v208_v59  ;;  %v212_v11 = vsel %vm203_vm0, %v210_v60, %v211_v61  ;;  %v229_v12 = vsel %vm203_vm0, %v208_v59, %v207_v58  ;;  %v230_v13 = vsel %vm203_vm0, %v211_v61, %v210_v60  ;;  %s1616_s19 = scalar_select %p5143_p1, 1, 0 }
  0x6a   : > { %v215_v14 = vsel %vm203_vm0, %v213_v62, %v214_v8  ;;  %v231_v15 = vsel %vm203_vm0, %v214_v8, %v213_v62  ;;  %v252_v16 = vrot.slane %v4937_v0, 3  ;;  %v253_v17 = vrot.slane %v4939_v1, 3 }
  0x6b   : > { %v255_v18 = vrot.slane %v4941_v2, 3  ;;  %v256_v19 = vrot.slane %v4943_v3, 3  ;;  %v258_v20 = vrot.slane %v4945_v4, 3  ;;  %v259_v21 = vrot.slane %v4947_v5, 3 }
  0x6c   : > { %v1551_v22 = vstv %s1550_s5  ;;  %v254_v23 = vsel %vm251_vm1, %v252_v16, %v253_v17  ;;  %v261_v24 = vrot.slane %v4949_v6, 3  ;;  %v262_v25 = vrot.slane %v4951_v7, 3 }
  0x6d   : > { %vm1552_vm2 = vcmp.ne.s32.totalorder %v1551_v22, 0  ;;  %v257_v26 = vsel %vm251_vm1, %v255_v18, %v256_v19  ;;  %v260_v27 = vsel %vm251_vm1, %v258_v20, %v259_v21  ;;  %v276_v28 = vsel %vm251_vm1, %v253_v17, %v252_v16 }
  0x6e   : > { %v1553_v29 = vsel %vm1552_vm2, %v206_v63, 0  ;;  %v1557_v30 = vsel %vm1552_vm2, %v228_v9, 0  ;;  %v1561_v31 = vsel %vm1552_vm2, %v209_v10, 0  ;;  %v1565_v32 = vsel %vm1552_vm2, %v229_v12, 0 }
  0x6f   : > { %v1569_v33 = vsel %vm1552_vm2, %v212_v11, 0  ;;  %v1573_v34 = vsel %vm1552_vm2, %v230_v13, 0  ;;  %v1577_v35 = vsel %vm1552_vm2, %v215_v14, 0  ;;  %v1581_v36 = vsel %vm1552_vm2, %v231_v15, 0 }
  0x70   : > { %v263_v37 = vsel %vm251_vm1, %v261_v24, %v262_v25  ;;  %v277_v38 = vsel %vm251_vm1, %v256_v19, %v255_v18  ;;  %v278_v39 = vsel %vm251_vm1, %v259_v21, %v258_v20  ;;  %v279_v40 = vsel %vm251_vm1, %v262_v25, %v261_v24 }
  0x71   : > { %v1584_v41 = vstv %s1583_s10  ;;  %v1887_v42 = vstv %s1886_s8  ;;  %vm307_vm3 = vcmask 1045504   ;;  %v308_v43 = vrot.slane %v4937_v0, 2 }
  0x72   : > { %vm1585_vm4 = vcmp.ne.s32.totalorder %v1584_v41, 0  ;;  %vm1888_vm5 = vcmp.ne.s32.totalorder %v1887_v42, 0  ;;  %v309_v44 = vrot.slane %v4939_v1, 2  ;;  %v311_v45 = vrot.slane %v4941_v2, 2 }
  0x73   : > { %v1586_v46 = vsel %vm1585_vm4, %v254_v23, %v1553_v29  ;;  %v1590_v47 = vsel %vm1585_vm4, %v276_v28, %v1557_v30  ;;  %v1594_v48 = vsel %vm1585_vm4, %v257_v26, %v1561_v31  ;;  %v1598_v49 = vsel %vm1585_vm4, %v277_v38, %v1565_v32 }
  0x74   : > { %v1602_v50 = vsel %vm1585_vm4, %v260_v27, %v1569_v33  ;;  %v1606_v51 = vsel %vm1585_vm4, %v278_v39, %v1573_v34  ;;  %v1610_v52 = vsel %vm1585_vm4, %v263_v37, %v1577_v35  ;;  %v1614_v53 = vsel %vm1585_vm4, %v279_v40, %v1581_v36 }
  0x75   : > { %v1889_v54 = vsel %vm1888_vm5, %v1586_v46, 0  ;;  %v1893_v55 = vsel %vm1888_vm5, %v1590_v47, 0  ;;  %v1897_v56 = vsel %vm1888_vm5, %v1594_v48, 0  ;;  %v1901_v57 = vsel %vm1888_vm5, %v1598_v49, 0 }
  0x76   : > { %v1905_v58 = vsel %vm1888_vm5, %v1602_v50, 0  ;;  %v1909_v59 = vsel %vm1888_vm5, %v1606_v51, 0  ;;  %v1913_v60 = vsel %vm1888_vm5, %v1610_v52, 0  ;;  %v1917_v61 = vsel %vm1888_vm5, %v1614_v53, 0 }
  0x77   : > { %v310_v62 = vsel %vm307_vm3, %v308_v43, %v309_v44  ;;  %v312_v63 = vrot.slane %v4943_v3, 2  ;;  %v314_v8 = vrot.slane %v4945_v4, 2  ;;  %v315_v9 = vrot.slane %v4947_v5, 2 }
  0x78   : > { %v317_v10 = vrot.slane %v4949_v6, 2  ;;  %v318_v11 = vrot.slane %v4951_v7, 2  ;;  %v332_v12 = vsel %vm307_vm3, %v309_v44, %v308_v43  ;;  %v1617_v13 = vstv %s1616_s19 }
  0x79   : > { %v313_v14 = vsel %vm307_vm3, %v311_v45, %v312_v63  ;;  %v316_v15 = vsel %vm307_vm3, %v314_v8, %v315_v9  ;;  %v333_v16 = vsel %vm307_vm3, %v312_v63, %v311_v45  ;;  %v334_v17 = vsel %vm307_vm3, %v315_v9, %v314_v8 }
  0x7a   : > { %v319_v18 = vsel %vm307_vm3, %v317_v10, %v318_v11  ;;  %v335_v19 = vsel %vm307_vm3, %v318_v11, %v317_v10  ;;  %vm1618_vm6 = vcmp.ne.s32.totalorder %v1617_v13, 0 }
  0x7b   : > { %v1619_v20 = vsel %vm1618_vm6, %v310_v62, %v1889_v54   ;;  %v1623_v54 = vsel %vm1618_vm6, %v332_v12, %v1893_v55   ;;  %v1627_v53 = vsel %vm1618_vm6, %v313_v14, %v1897_v56   ;;  %v1631_v52 = vsel %vm1618_vm6, %v333_v16, %v1901_v57  }
  0x7c   : > { %v1635_v51 = vsel %vm1618_vm6, %v316_v15, %v1905_v58   ;;  %v1639_v50 = vsel %vm1618_vm6, %v334_v17, %v1909_v59   ;;  %v1643_v49 = vsel %vm1618_vm6, %v319_v18, %v1913_v60   ;;  %v1647_v48 = vsel %vm1618_vm6, %v335_v19, %v1917_v61  }
  0x7d   : > { %v6349_v55 = vmov %v1619_v20 }
  0x7e PF: > { %vm363_vm7 = vcmask 1046528   ;;  %v364_v21 = vrot.slane %v4937_v0, 1  ;;  %v365_v22 = vrot.slane %v4939_v1, 1  ;;  %v367_v23 = vrot.slane %v4941_v2, 1  ;;  %s1649_s25 = scalar_select %p5069_p10, 1, 0  ;;  %v4148_v55 = vphi %v5087_v55, %v6349_v55   ;;  %v4144_v54 = vphi %v5085_v54, %v1623_v54   ;;  %v4140_v53 = vphi %v5083_v53, %v1627_v53   ;;  %v4136_v52 = vphi %v5081_v52, %v1631_v52   ;;  %v4132_v51 = vphi %v5079_v51, %v1635_v51   ;;  %v4128_v50 = vphi %v5077_v50, %v1639_v50   ;;  %v4124_v49 = vphi %v5075_v49, %v1643_v49   ;;  %v4120_v48 = vphi %v5073_v48, %v1647_v48  }
  0x7f   : > { %v368_v24 = vrot.slane %v4943_v3, 1  ;;  %v370_v25 = vrot.slane %v4945_v4, 1  ;;  %v371_v26 = vrot.slane %v4947_v5, 1  ;;  %v373_v27 = vrot.slane %v4949_v6, 1 }
  0x80   : > { %v366_v28 = vsel %vm363_vm7, %v364_v21, %v365_v22  ;;  %v374_v29 = vrot.slane %v4951_v7, 1  ;;  %v388_v30 = vsel %vm363_vm7, %v365_v22, %v364_v21  ;;  %v1650_v31 = vstv %s1649_s25 }
  0x81   : > { %v369_v32 = vsel %vm363_vm7, %v367_v23, %v368_v24  ;;  %v372_v33 = vsel %vm363_vm7, %v370_v25, %v371_v26  ;;  %v389_v34 = vsel %vm363_vm7, %v368_v24, %v367_v23  ;;  %v390_v35 = vsel %vm363_vm7, %v371_v26, %v370_v25 }
  0x82   : > { %v375_v36 = vsel %vm363_vm7, %v373_v27, %v374_v29  ;;  %v391_v37 = vsel %vm363_vm7, %v374_v29, %v373_v27  ;;  %vm1651_vm8 = vcmp.ne.s32.totalorder %v1650_v31, 0 }
  0x83   : > { %v1652_v47 = vsel %vm1651_vm8, %v366_v28, %v4148_v55   ;;  %v1656_v46 = vsel %vm1651_vm8, %v388_v30, %v4144_v54   ;;  %v1660_v45 = vsel %vm1651_vm8, %v369_v32, %v4140_v53   ;;  %v1664_v44 = vsel %vm1651_vm8, %v389_v34, %v4136_v52  }
  0x84   : > { %v1668_v43 = vsel %vm1651_vm8, %v372_v33, %v4132_v51   ;;  %v1672_v42 = vsel %vm1651_vm8, %v390_v35, %v4128_v50   ;;  %v1676_v41 = vsel %vm1651_vm8, %v375_v36, %v4124_v49   ;;  %v1680_v40 = vsel %vm1651_vm8, %v391_v37, %v4120_v48  }
  0x85 PF: > { %s1682_s26 = scalar_select %p5046_p8, 1, 0  ;;  %v4180_v47 = vphi %v5064_v47, %v1652_v47   ;;  %v4176_v46 = vphi %v5062_v46, %v1656_v46   ;;  %v4172_v45 = vphi %v5060_v45, %v1660_v45   ;;  %v4168_v44 = vphi %v5058_v44, %v1664_v44   ;;  %v4164_v43 = vphi %v5056_v43, %v1668_v43   ;;  %v4160_v42 = vphi %v5054_v42, %v1672_v42   ;;  %v4156_v41 = vphi %v5052_v41, %v1676_v41   ;;  %v4152_v40 = vphi %v5050_v40, %v1680_v40  }
  0x87   : > { %v1683_v38 = vstv %s1682_s26 }
  0x88   : > { %vm1684_vm9 = vcmp.ne.s32.totalorder %v1683_v38, 0 }
  0x89   : > { %v1685_v39 = vsel %vm1684_vm9, %v4937_v0, %v4180_v47   ;;  %v1689_v38 = vsel %vm1684_vm9, %v4939_v1, %v4176_v46   ;;  %v1693_v37 = vsel %vm1684_vm9, %v4941_v2, %v4172_v45   ;;  %v1697_v36 = vsel %vm1684_vm9, %v4943_v3, %v4168_v44  }
  0x8a   : > { %v1701_v35 = vsel %vm1684_vm9, %v4945_v4, %v4164_v43   ;;  %v1705_v34 = vsel %vm1684_vm9, %v4947_v5, %v4160_v42   ;;  %v1709_v33 = vsel %vm1684_vm9, %v4949_v6, %v4156_v41   ;;  %v1713_v32 = vsel %vm1684_vm9, %v4951_v7, %v4152_v40  }
  0x8b PF: > { %vm438_vm10 = vcmask 1040384   ;;  %v439_v40 = vrot.slane %v4937_v0, 7  ;;  %v440_v41 = vrot.slane %v4939_v1, 7  ;;  %v442_v42 = vrot.slane %v4941_v2, 7  ;;  %s1715_s21 = scalar_select %p5023_p7, 1, 0  ;;  %v4212_v39 = vphi %v5041_v39, %v1685_v39   ;;  %v4208_v38 = vphi %v5039_v38, %v1689_v38   ;;  %v4204_v37 = vphi %v5037_v37, %v1693_v37   ;;  %v4200_v36 = vphi %v5035_v36, %v1697_v36   ;;  %v4196_v35 = vphi %v5033_v35, %v1701_v35   ;;  %v4192_v34 = vphi %v5031_v34, %v1705_v34   ;;  %v4188_v33 = vphi %v5029_v33, %v1709_v33   ;;  %v4184_v32 = vphi %v5027_v32, %v1713_v32  }
  0x8c   : > { %v443_v43 = vrot.slane %v4943_v3, 7  ;;  %v445_v44 = vrot.slane %v4945_v4, 7  ;;  %v446_v45 = vrot.slane %v4947_v5, 7  ;;  %v448_v46 = vrot.slane %v4949_v6, 7 }
  0x8d   : > { %v441_v47 = vsel %vm438_vm10, %v439_v40, %v440_v41  ;;  %v449_v48 = vrot.slane %v4951_v7, 7  ;;  %v459_v51 = vsel %vm438_vm10, %v4937_v0, %v439_v40  ;;  %v460_v52 = vsel %vm438_vm10, %v4941_v2, %v442_v42 }
  0x8e   : > { %v444_v49 = vsel %vm438_vm10, %v442_v42, %v443_v43  ;;  %v447_v50 = vsel %vm438_vm10, %v445_v44, %v446_v45  ;;  %v461_v54 = vsel %vm438_vm10, %v4945_v4, %v445_v44  ;;  %v462_v55 = vsel %vm438_vm10, %v4949_v6, %v448_v46 }
  0x8f   : > { %v450_v53 = vsel %vm438_vm10, %v448_v46, %v449_v48  ;;  %v1716_v56 = vstv %s1715_s21 }
  0x90   : > { %vm1717_vm11 = vcmp.ne.s32.totalorder %v1716_v56, 0 }
  0x91   : > { %v1718_v31 = vsel %vm1717_vm11, %v459_v51, %v4212_v39   ;;  %v1722_v30 = vsel %vm1717_vm11, %v441_v47, %v4208_v38   ;;  %v1726_v29 = vsel %vm1717_vm11, %v460_v52, %v4204_v37   ;;  %v1730_v28 = vsel %vm1717_vm11, %v444_v49, %v4200_v36  }
  0x92   : > { %v1734_v27 = vsel %vm1717_vm11, %v461_v54, %v4196_v35   ;;  %v1738_v26 = vsel %vm1717_vm11, %v447_v50, %v4192_v34   ;;  %v1742_v25 = vsel %vm1717_vm11, %v462_v55, %v4188_v33   ;;  %v1746_v24 = vsel %vm1717_vm11, %v450_v53, %v4184_v32  }
  0x93 PF: > { %v482_v39 = vlaneseq  ;;  %vm506_vm12 = vcmask 1041408   ;;  %v507_v57 = vrot.slane %v4937_v0, 6  ;;  %v508_v58 = vrot.slane %v4939_v1, 6  ;;  %s1748_s18 = scalar_select %p5000_p5, 1, 0  ;;  %v4244_v31 = vphi %v5018_v31, %v1718_v31   ;;  %v4240_v30 = vphi %v5016_v30, %v1722_v30   ;;  %v4236_v29 = vphi %v5014_v29, %v1726_v29   ;;  %v4232_v28 = vphi %v5012_v28, %v1730_v28   ;;  %v4228_v27 = vphi %v5010_v27, %v1734_v27   ;;  %v4224_v26 = vphi %v5008_v26, %v1738_v26   ;;  %v4220_v25 = vphi %v5006_v25, %v1742_v25   ;;  %v4216_v24 = vphi %v5004_v24, %v1746_v24  }
  0x94   : > { %v510_v59 = vrot.slane %v4941_v2, 6  ;;  %v511_v60 = vrot.slane %v4943_v3, 6  ;;  %v513_v61 = vrot.slane %v4945_v4, 6  ;;  %v514_v62 = vrot.slane %v4947_v5, 6 }
  0x95   : > { %v483_v63 = vshrl.u32 %v482_v39, 7  ;;  %v509_v8 = vsel %vm506_vm12, %v507_v57, %v508_v58  ;;  %v516_v9 = vrot.slane %v4949_v6, 6  ;;  %v517_v10 = vrot.slane %v4951_v7, 6 }
  0x96   : > { %v512_v11 = vsel %vm506_vm12, %v510_v59, %v511_v60  ;;  %v515_v12 = vsel %vm506_vm12, %v513_v61, %v514_v62  ;;  %v1749_v13 = vstv %s1748_s18 }
  0x97   : > { %v484_v14 = vsub.s32 0, %v483_v63  ;;  %v518_v15 = vsel %vm506_vm12, %v516_v9, %v517_v10  ;;  %vm1750_vm13 = vcmp.ne.s32.totalorder %v1749_v13, 0 }
  0x98   : > { %v1755_v22 = vsel %vm1750_vm13, %v509_v8, %v4240_v30   ;;  %v1763_v20 = vsel %vm1750_vm13, %v512_v11, %v4232_v28   ;;  %v1771_v18 = vsel %vm1750_vm13, %v515_v12, %v4224_v26   ;;  %v1779_v16 = vsel %vm1750_vm13, %v518_v15, %v4216_v24  }
  0x99   : > { %v485_v17 = vrot.slane %v4937_v0, %v484_v14  ;;  %v489_v19 = vrot.slane %v4941_v2, %v484_v14  ;;  %v493_v21 = vrot.slane %v4945_v4, %v484_v14  ;;  %v497_v23 = vrot.slane %v4949_v6, %v484_v14 }
  0x9b   : > { %v527_v32 = vsel %vm506_vm12, %v485_v17, %v507_v57  ;;  %v528_v33 = vsel %vm506_vm12, %v489_v19, %v510_v59  ;;  %v529_v30 = vsel %vm506_vm12, %v493_v21, %v513_v61  ;;  %v530_v28 = vsel %vm506_vm12, %v497_v23, %v516_v9 }
  0x9c   : > { %v1751_v23 = vsel %vm1750_vm13, %v527_v32, %v4244_v31   ;;  %v1759_v21 = vsel %vm1750_vm13, %v528_v33, %v4236_v29   ;;  %v1767_v19 = vsel %vm1750_vm13, %v529_v30, %v4228_v27   ;;  %v1775_v17 = vsel %vm1750_vm13, %v530_v28, %v4220_v25  }
  0x9d PF: > { %v550_v24 = vlaneseq  ;;  %vm574_vm14 = vcmask 1042432   ;;  %v575_v25 = vrot.slane %v4937_v0, 5  ;;  %v576_v26 = vrot.slane %v4939_v1, 5  ;;  %s1781_s11 = scalar_select %p4977_p4, 1, 0  ;;  %v4276_v23 = vphi %v4995_v23, %v1751_v23   ;;  %v4272_v22 = vphi %v4993_v22, %v1755_v22   ;;  %v4268_v21 = vphi %v4991_v21, %v1759_v21   ;;  %v4264_v20 = vphi %v4989_v20, %v1763_v20   ;;  %v4260_v19 = vphi %v4987_v19, %v1767_v19   ;;  %v4256_v18 = vphi %v4985_v18, %v1771_v18   ;;  %v4252_v17 = vphi %v4983_v17, %v1775_v17   ;;  %v4248_v16 = vphi %v4981_v16, %v1779_v16  }
  0x9e   : > { %v578_v27 = vrot.slane %v4941_v2, 5  ;;  %v579_v29 = vrot.slane %v4943_v3, 5  ;;  %v581_v31 = vrot.slane %v4945_v4, 5  ;;  %v582_v34 = vrot.slane %v4947_v5, 5 }
  0x9f   : > { %v551_v35 = vshrl.u32 %v550_v24, 7  ;;  %v577_v36 = vsel %vm574_vm14, %v575_v25, %v576_v26  ;;  %v584_v37 = vrot.slane %v4949_v6, 5  ;;  %v585_v38 = vrot.slane %v4951_v7, 5 }
  0xa0   : > { %v580_v40 = vsel %vm574_vm14, %v578_v27, %v579_v29  ;;  %v583_v41 = vsel %vm574_vm14, %v581_v31, %v582_v34  ;;  %v1782_v42 = vstv %s1781_s11 }
  0xa1   : > { %v552_v43 = vsub.s32 0, %v551_v35  ;;  %v586_v44 = vsel %vm574_vm14, %v584_v37, %v585_v38  ;;  %vm1783_vm15 = vcmp.ne.s32.totalorder %v1782_v42, 0 }
  0xa2   : > { %v1788_v14 = vsel %vm1783_vm15, %v577_v36, %v4272_v22   ;;  %v1796_v12 = vsel %vm1783_vm15, %v580_v40, %v4264_v20   ;;  %v1804_v10 = vsel %vm1783_vm15, %v583_v41, %v4256_v18   ;;  %v1812_v8 = vsel %vm1783_vm15, %v586_v44, %v4248_v16  }
  0xa3   : > { %v553_v45 = vrot.slane %v4937_v0, %v552_v43  ;;  %v557_v46 = vrot.slane %v4941_v2, %v552_v43  ;;  %v561_v47 = vrot.slane %v4945_v4, %v552_v43  ;;  %v565_v48 = vrot.slane %v4949_v6, %v552_v43 }
  0xa5   : > { %v595_v49 = vsel %vm574_vm14, %v553_v45, %v575_v25  ;;  %v596_v50 = vsel %vm574_vm14, %v557_v46, %v578_v27  ;;  %v597_v22 = vsel %vm574_vm14, %v561_v47, %v581_v31  ;;  %v598_v20 = vsel %vm574_vm14, %v565_v48, %v584_v37 }
  0xa6   : > { %v1784_v15 = vsel %vm1783_vm15, %v595_v49, %v4276_v23   ;;  %v1792_v13 = vsel %vm1783_vm15, %v596_v50, %v4268_v21   ;;  %v1800_v11 = vsel %vm1783_vm15, %v597_v22, %v4260_v19   ;;  %v1808_v9 = vsel %vm1783_vm15, %v598_v20, %v4252_v17  }
  0xa7 PF: > { %v618_v16 = vlaneseq  ;;  %vm642_vm0 = vcmask 1043456   ;;  %v643_v18 = vrot.slane %v4937_v0, 4  ;;  %v644_v51 = vrot.slane %v4939_v1, 4  ;;  %s1814_s9 = scalar_select %p1501_p13, 1, 0  ;;  %v4308_v15 = vphi %v4972_v15, %v1784_v15   ;;  %v4304_v14 = vphi %v4970_v14, %v1788_v14   ;;  %v4300_v13 = vphi %v4968_v13, %v1792_v13   ;;  %v4296_v12 = vphi %v4966_v12, %v1796_v12   ;;  %v4292_v11 = vphi %v4964_v11, %v1800_v11   ;;  %v4288_v10 = vphi %v4962_v10, %v1804_v10   ;;  %v4284_v9 = vphi %v4960_v9, %v1808_v9   ;;  %v4280_v8 = vphi %v4958_v8, %v1812_v8  }
  0xa8   : > { %v646_v52 = vrot.slane %v4941_v2, 4  ;;  %v647_v53 = vrot.slane %v4943_v3, 4  ;;  %v649_v54 = vrot.slane %v4945_v4, 4  ;;  %v650_v55 = vrot.slane %v4947_v5, 4  ;;  %p675_p3 = scmp.gt.s32.totalorder %s4935_s4, 0  ;;  %p1516_p6 = scmp.lt.s32.totalorder %s4935_s4, 8 }
  0xa9   : > { %v619_v56 = vshrl.u32 %v618_v16, 7  ;;  %v645_v39 = vsel %vm642_vm0, %v643_v18, %v644_v51  ;;  %v652_v57 = vrot.slane %v4949_v6, 4  ;;  %v653_v1 = vrot.slane %v4951_v7, 4 }
  0xaa   : > { %v648_v58 = vsel %vm642_vm0, %v646_v52, %v647_v53  ;;  %v651_v59 = vsel %vm642_vm0, %v649_v54, %v650_v55  ;;  %v1815_v60 = vstv %s1814_s9  ;;  %s676_s6 = scalar_select %p675_p3, %s4935_s4, 0  ;;  %v5500_v30 = vmov 0  }
  0xab   : > { %v620_v3 = vsub.s32 0, %v619_v56  ;;  %v654_v61 = vsel %vm642_vm0, %v652_v57, %v653_v1  ;;  %vm5448_vm1 = vcmp.ne.s32.totalorder %v1815_v60, 0  ;;  %v5504_v28 = vmov 0  }
  0xac   : > { %v5454_v62 = vsel %vm5448_vm1, %v645_v39, %v4304_v14  ;;  %v5458_v7 = vsel %vm5448_vm1, %v648_v58, %v4296_v12  ;;  %v5462_v63 = vsel %vm5448_vm1, %v651_v59, %v4288_v10  ;;  %v5466_v17 = vsel %vm5448_vm1, %v654_v61, %v4280_v8  ;;  %s6407_s6 = smov (!%p1516_p6, %s676_s6), 8 }
  0xad   : > { %v621_v19 = vrot.slane %v4937_v0, %v620_v3  ;;  %v625_v14 = vrot.slane %v4941_v2, %v620_v3  ;;  %v629_v21 = vrot.slane %v4945_v4, %v620_v3  ;;  %v633_v12 = vrot.slane %v4949_v6, %v620_v3  ;;  %p679_p11 = scmp.ne.s32.totalorder %s6407_s6, 0  ;;  %p1521_p12 = scmp.eq.s32.totalorder %s6407_s6, 0 }
  0xae   : > { %v5498_v6 = vmov 0   ;;  %v5508_v24 = vmov 0   ;;  %v5512_v25 = vmov 0   ;;  %s1522_s4 = sadd.s32 (!%p1521_p12), 4294967295, %s6407_s6 }
  0xaf   : > { %v663_v10 = vsel %vm642_vm0, %v621_v19, %v643_v18  ;;  %v664_v23 = vsel %vm642_vm0, %v625_v14, %v646_v52  ;;  %v665_v8 = vsel %vm642_vm0, %v629_v21, %v649_v54  ;;  %v666_v32 = vsel %vm642_vm0, %v633_v12, %v652_v57  ;;  %682 = sbr.rel (%p1521_p12) target bundleno = 1290 (0x50a), region = 96  ;;  %p5515_p13 = scmp.ne.s32.totalorder (!%p1521_p12), %s1522_s4, 0 }
  0xb0   : > { %v5483_v33 = vsel %vm5448_vm1, %v663_v10, %v4308_v15  ;;  %v5487_v0 = vsel %vm5448_vm1, %v664_v23, %v4300_v13  ;;  %v5491_v2 = vsel %vm5448_vm1, %v665_v8, %v4292_v11  ;;  %v5495_v4 = vsel %vm5448_vm1, %v666_v32, %v4284_v9  ;;  %p1523_p4 = scmp.eq.s32.totalorder (!%p1521_p12), %s1522_s4, 0 }
  0xb1   : > { %v5502_v15 = vmov 0   ;;  %v5506_v13 = vmov 0   ;;  %v5510_v11 = vmov 0  }
  0xb4   : > { %v5519_v9 = vmov 0   ;;  %v5521_v26 = vmov 0   ;;  %v5523_v27 = vmov 0   ;;  %v5525_v29 = vmov 0   ;;  %687 = sbr.rel (%p1523_p4) target bundleno = 1128 (0x468), region = 100  ;;  %s1524_s29 = sadd.s32 (!%p1523_p4), 4294967294, %s6407_s6 }
  0xb5   : > { %v5527_v31 = vmov 0   ;;  %v5529_v34 = vmov 0   ;;  %v5531_v35 = vmov 0   ;;  %v5533_v36 = vmov 0   ;;  %p5536_p5 = scmp.ne.s32.totalorder (!%p1523_p4), %s1524_s29, 0  ;;  %p1525_p7 = scmp.eq.s32.totalorder (!%p1523_p4), %s1524_s29, 0 }
  0xb9   : > { %v5540_v37 = vmov 0   ;;  %v5542_v38 = vmov 0   ;;  %v5544_v40 = vmov 0   ;;  %v5546_v41 = vmov 0   ;;  %692 = sbr.rel (%p1525_p7) target bundleno = 966 (0x3c6), region = 104  ;;  %s1526_s7 = sadd.s32 (!%p1525_p7), 4294967293, %s6407_s6 }
  0xba   : > { %v5548_v42 = vmov 0   ;;  %v5550_v43 = vmov 0   ;;  %v5552_v44 = vmov 0   ;;  %v5554_v45 = vmov 0   ;;  %p5557_p8 = scmp.ne.s32.totalorder (!%p1525_p7), %s1526_s7, 0  ;;  %p1527_p10 = scmp.eq.s32.totalorder (!%p1525_p7), %s1526_s7, 0 }
  0xbe   : > { %v5561_v46 = vmov 0   ;;  %v5563_v47 = vmov 0   ;;  %v5565_v48 = vmov 0   ;;  %v5567_v49 = vmov 0   ;;  %697 = sbr.rel (%p1527_p10) target bundleno = 833 (0x341), region = 108  ;;  %s1528_s5 = sadd.s32 (!%p1527_p10), 4294967292, %s6407_s6 }
  0xbf   : > { %v5569_v50 = vmov 0   ;;  %v5571_v22 = vmov 0   ;;  %v5573_v20 = vmov 0   ;;  %v5575_v16 = vmov 0   ;;  %p5578_p0 = scmp.eq.s32.totalorder (!%p1527_p10), %s1528_s5, 0 }
  0xc3   : > { %v5582_v18 = vmov 0   ;;  %v5584_v51 = vmov 0   ;;  %v5586_v52 = vmov 0   ;;  %v5588_v53 = vmov 0   ;;  %702 = sbr.rel (%p5578_p0) target bundleno = 827 (0x33b), region = 112  ;;  %s1530_s10 = sadd.s32 (!%p5578_p0), 4294967291, %s6407_s6 }
  0xc4   : > { %v5590_v54 = vmov 0   ;;  %v5592_v55 = vmov 0   ;;  %v5594_v56 = vmov 0   ;;  %v5596_v39 = vmov 0   ;;  %p5601_p2 = scmp.ne.s32.totalorder (!%p5578_p0), %s1530_s10, 0  ;;  %p1531_p9 = scmp.eq.s32.totalorder (!%p5578_p0), %s1530_s10, 0 }
  0xc8   : > { %v5605_v57 = vmov 0   ;;  %v5607_v1 = vmov 0   ;;  %v5609_v58 = vmov 0   ;;  %v5611_v59 = vmov 0   ;;  %707 = sbr.rel (%p1531_p9) target bundleno = 694 (0x2b6), region = 116  ;;  %s1532_s19 = sadd.s32 (!%p1531_p9), 4294967290, %s6407_s6 }
  0xc9   : > { %v5613_v60 = vmov 0   ;;  %v5615_v3 = vmov 0   ;;  %v5617_v61 = vmov 0   ;;  %v5619_v5 = vmov 0   ;;  %p5622_p1 = scmp.ne.s32.totalorder (!%p1531_p9), %s1532_s19, 0  ;;  %p1533_p3 = scmp.eq.s32.totalorder (!%p1531_p9), %s1532_s19, 0 }
  0xcd   : > { %v5626_v19 = vmov 0   ;;  %v5628_v14 = vmov 0   ;;  %v5630_v21 = vmov 0   ;;  %v5632_v12 = vmov 0   ;;  %712 = sbr.rel (%p1533_p3) target bundleno = 532 (0x214), region = 120  ;;  %s1534_s26 = sadd.s32 (!%p1533_p3), 4294967289, %s6407_s6 }
  0xce   : > { %v5634_v10 = vmov 0   ;;  %v5636_v23 = vmov 0   ;;  %v5638_v8 = vmov 0   ;;  %v5640_v32 = vmov 0   ;;  %p5643_p6 = scmp.ne.s32.totalorder (!%p1533_p3), %s1534_s26, 0  ;;  %p1535_p12 = scmp.eq.s32.totalorder (!%p1533_p3), %s1534_s26, 0 }
  0xd2   : > { %v5647_v6 = vmov 0   ;;  %v5649_v30 = vmov 0   ;;  %v5651_v15 = vmov 0   ;;  %v5653_v28 = vmov 0   ;;  %717 = sbr.rel (%p1535_p12) target bundleno = 370 (0x172), region = 124  ;;  %s4795_s18 = smov (!%p1535_p12), 124  }
  0xd3   : > { %v5655_v13 = vmov 0   ;;  %v5657_v24 = vmov 0   ;;  %v5659_v11 = vmov 0   ;;  %v5661_v25 = vmov 0  }
  0xd7   : > { %v4794_v9 = vmov 79   ;;  %vm782_vm2 = vcmask 621568  }
  0xd8   : > { %3331 = vset.pattern.permute.xlu1 %v4794_v9  ;;  %3330 = vset.pattern.permute.xlu0 %v4794_v9 }
  0xd9   : > { %730 = vperm.xlu1 %3331, %v5487_v0   ;;  %720 = vperm.xlu0 %3330, %v5483_v33  }
  0xdd   : > { %735 = vperm.xlu1 %3331, %v5458_v7   ;;  %725 = vperm.xlu0 %3330, %v5454_v62  }
  0xe1   : > { %745 = vperm.xlu1 %3331, %v5462_v63   ;;  %740 = vperm.xlu0 %3330, %v5491_v2  }
  0xe5   : > { %755 = vperm.xlu1 %3331, %v5466_v17   ;;  %750 = vperm.xlu0 %3330, %v5495_v4  }
  0xe9   : > { %760 = vrot.lane.b32.xlu1 %v5454_v62, %s4795_s18  ;;  %758 = vrot.lane.b32.xlu0 %v5483_v33, %s4795_s18 }
  0xed   : > { %764 = vrot.lane.b32.xlu1 %v5458_v7, %s4795_s18  ;;  %762 = vrot.lane.b32.xlu0 %v5487_v0, %s4795_s18 }
  0xf1   : > { %768 = vrot.lane.b32.xlu1 %v5462_v63, %s4795_s18  ;;  %766 = vrot.lane.b32.xlu0 %v5491_v2, %s4795_s18 }
  0xf5   : > { %772 = vrot.lane.b32.xlu1 %v5466_v17, %s4795_s18  ;;  %770 = vrot.lane.b32.xlu0 %v5495_v4, %s4795_s18 }
 0x154   : > { %v731_v26 = vpop.permute.xlu1 %730  ;;  %v721_v27 = vpop.permute.xlu0 %720 }
 0x158   : > { %v736_v29 = vpop.permute.xlu1 %735  ;;  %v726_v31 = vpop.permute.xlu0 %725 }
 0x15c   : > { %v746_v34 = vpop.permute.xlu1 %745  ;;  %v741_v35 = vpop.permute.xlu0 %740 }
 0x160   : > { %v756_v36 = vpop.permute.xlu1 %755  ;;  %v751_v37 = vpop.permute.xlu0 %750 }
 0x164   : > { %v761_v38 = vpop.permute.xlu1 %760  ;;  %v759_v40 = vpop.permute.xlu0 %758 }
 0x165   : > { %v784_v11 = vsel %vm782_vm2, %v761_v38, %v726_v31   ;;  %v783_v25 = vsel %vm782_vm2, %v759_v40, %v721_v27  }
 0x168   : > { %v765_v41 = vpop.permute.xlu1 %764  ;;  %v763_v42 = vpop.permute.xlu0 %762 }
 0x169   : > { %v786_v13 = vsel %vm782_vm2, %v765_v41, %v736_v29   ;;  %v785_v24 = vsel %vm782_vm2, %v763_v42, %v731_v26  }
 0x16c   : > { %v769_v43 = vpop.permute.xlu1 %768  ;;  %v767_v44 = vpop.permute.xlu0 %766 }
 0x16d   : > { %v788_v15 = vsel %vm782_vm2, %v769_v43, %v746_v34   ;;  %v787_v28 = vsel %vm782_vm2, %v767_v44, %v741_v35  }
 0x170   : > { %v773_v45 = vpop.permute.xlu1 %772  ;;  %v771_v46 = vpop.permute.xlu0 %770 }
 0x171   : > { %v790_v6 = vsel %vm782_vm2, %v773_v45, %v756_v36   ;;  %v789_v30 = vsel %vm782_vm2, %v771_v46, %v751_v37  }
 0x172 PF: > { %801 = sbr.rel (%p5643_p6) target bundleno = 530 (0x212), region = 128  ;;  %s4797_s11 = smov (!%p5643_p6), 125   ;;  %v4340_v25 = vphi %v5661_v25, %v783_v25   ;;  %v4336_v11 = vphi %v5659_v11, %v784_v11   ;;  %v4332_v24 = vphi %v5657_v24, %v785_v24   ;;  %v4328_v13 = vphi %v5655_v13, %v786_v13   ;;  %v4324_v28 = vphi %v5653_v28, %v787_v28   ;;  %v4320_v15 = vphi %v5651_v15, %v788_v15   ;;  %v4316_v30 = vphi %v5649_v30, %v789_v30   ;;  %v4312_v6 = vphi %v5647_v6, %v790_v6  }
 0x177   : > { %v4796_v47 = vmov 79   ;;  %vm866_vm3 = vcmask 629760  }
 0x178   : > { %3333 = vset.pattern.permute.xlu1 %v4796_v47  ;;  %3332 = vset.pattern.permute.xlu0 %v4796_v47 }
 0x179   : > { %814 = vperm.xlu1 %3333, %v5487_v0   ;;  %804 = vperm.xlu0 %3332, %v5483_v33  }
 0x17d   : > { %819 = vperm.xlu1 %3333, %v5458_v7   ;;  %809 = vperm.xlu0 %3332, %v5454_v62  }
 0x181   : > { %829 = vperm.xlu1 %3333, %v5462_v63   ;;  %824 = vperm.xlu0 %3332, %v5491_v2  }
 0x185   : > { %839 = vperm.xlu1 %3333, %v5466_v17   ;;  %834 = vperm.xlu0 %3332, %v5495_v4  }
 0x189   : > { %844 = vrot.lane.b32.xlu1 %v5454_v62, %s4797_s11  ;;  %842 = vrot.lane.b32.xlu0 %v5483_v33, %s4797_s11 }
 0x18d   : > { %848 = vrot.lane.b32.xlu1 %v5458_v7, %s4797_s11  ;;  %846 = vrot.lane.b32.xlu0 %v5487_v0, %s4797_s11 }
 0x191   : > { %852 = vrot.lane.b32.xlu1 %v5462_v63, %s4797_s11  ;;  %850 = vrot.lane.b32.xlu0 %v5491_v2, %s4797_s11 }
 0x195   : > { %856 = vrot.lane.b32.xlu1 %v5466_v17, %s4797_s11  ;;  %854 = vrot.lane.b32.xlu0 %v5495_v4, %s4797_s11 }
 0x1f4   : > { %v815_v48 = vpop.permute.xlu1 %814  ;;  %v805_v49 = vpop.permute.xlu0 %804 }
 0x1f8   : > { %v820_v50 = vpop.permute.xlu1 %819  ;;  %v810_v22 = vpop.permute.xlu0 %809 }
 0x1fc   : > { %v830_v20 = vpop.permute.xlu1 %829  ;;  %v825_v16 = vpop.permute.xlu0 %824 }
 0x200   : > { %v840_v18 = vpop.permute.xlu1 %839  ;;  %v835_v51 = vpop.permute.xlu0 %834 }
 0x204   : > { %v845_v52 = vpop.permute.xlu1 %844  ;;  %v843_v53 = vpop.permute.xlu0 %842 }
 0x205   : > { %v868_v11 = vsel %vm866_vm3, %v845_v52, %v810_v22   ;;  %v867_v25 = vsel %vm866_vm3, %v843_v53, %v805_v49  }
 0x208   : > { %v849_v54 = vpop.permute.xlu1 %848  ;;  %v847_v55 = vpop.permute.xlu0 %846 }
 0x209   : > { %v870_v13 = vsel %vm866_vm3, %v849_v54, %v820_v50   ;;  %v869_v24 = vsel %vm866_vm3, %v847_v55, %v815_v48  }
 0x20c   : > { %v853_v56 = vpop.permute.xlu1 %852  ;;  %v851_v39 = vpop.permute.xlu0 %850 }
 0x20d   : > { %v872_v15 = vsel %vm866_vm3, %v853_v56, %v830_v20   ;;  %v871_v28 = vsel %vm866_vm3, %v851_v39, %v825_v16  }
 0x210   : > { %v857_v57 = vpop.permute.xlu1 %856  ;;  %v855_v1 = vpop.permute.xlu0 %854 }
 0x211   : > { %v874_v6 = vsel %vm866_vm3, %v857_v57, %v840_v18   ;;  %v873_v30 = vsel %vm866_vm3, %v855_v1, %v835_v51  }
 0x212 PF: > { %v6359_v19 = vmov %v4344_v6  ;;  %v6360_v14 = vmov %v4348_v30  ;;  %v6361_v21 = vmov %v4352_v15  ;;  %v6362_v12 = vmov %v4356_v28  ;;  %v4372_v25 = vphi %v4340_v25, %v867_v25   ;;  %v4368_v11 = vphi %v4336_v11, %v868_v11   ;;  %v4364_v24 = vphi %v4332_v24, %v869_v24   ;;  %v4360_v13 = vphi %v4328_v13, %v870_v13   ;;  %v4356_v28 = vphi %v4324_v28, %v871_v28   ;;  %v4352_v15 = vphi %v4320_v15, %v872_v15   ;;  %v4348_v30 = vphi %v4316_v30, %v873_v30   ;;  %v4344_v6 = vphi %v4312_v6, %v874_v6  }
 0x213   : > { %v6363_v10 = vmov %v4360_v13  ;;  %v6364_v23 = vmov %v4364_v24  ;;  %v6365_v8 = vmov %v4368_v11  ;;  %v6366_v32 = vmov %v4372_v25 }
 0x214 PF: > { %893 = sbr.rel (%p5622_p1) target bundleno = 692 (0x2b4), region = 132  ;;  %s4799_s9 = smov (!%p5622_p1), 126   ;;  %v4404_v32 = vphi %v5640_v32, %v6366_v32   ;;  %v4400_v8 = vphi %v5638_v8, %v6365_v8   ;;  %v4396_v23 = vphi %v5636_v23, %v6364_v23   ;;  %v4392_v10 = vphi %v5634_v10, %v6363_v10   ;;  %v4388_v12 = vphi %v5632_v12, %v6362_v12   ;;  %v4384_v21 = vphi %v5630_v21, %v6361_v21   ;;  %v4380_v14 = vphi %v5628_v14, %v6360_v14   ;;  %v4376_v19 = vphi %v5626_v19, %v6359_v19  }
 0x219   : > { %v4798_v58 = vmov 79   ;;  %vm958_vm4 = vcmask 637952  }
 0x21a   : > { %3335 = vset.pattern.permute.xlu1 %v4798_v58  ;;  %3334 = vset.pattern.permute.xlu0 %v4798_v58 }
 0x21b   : > { %906 = vperm.xlu1 %3335, %v5487_v0   ;;  %896 = vperm.xlu0 %3334, %v5483_v33  }
 0x21f   : > { %911 = vperm.xlu1 %3335, %v5458_v7   ;;  %901 = vperm.xlu0 %3334, %v5454_v62  }
 0x223   : > { %921 = vperm.xlu1 %3335, %v5462_v63   ;;  %916 = vperm.xlu0 %3334, %v5491_v2  }
 0x227   : > { %931 = vperm.xlu1 %3335, %v5466_v17   ;;  %926 = vperm.xlu0 %3334, %v5495_v4  }
 0x22b   : > { %936 = vrot.lane.b32.xlu1 %v5454_v62, %s4799_s9  ;;  %934 = vrot.lane.b32.xlu0 %v5483_v33, %s4799_s9 }
 0x22f   : > { %940 = vrot.lane.b32.xlu1 %v5458_v7, %s4799_s9  ;;  %938 = vrot.lane.b32.xlu0 %v5487_v0, %s4799_s9 }
 0x233   : > { %944 = vrot.lane.b32.xlu1 %v5462_v63, %s4799_s9  ;;  %942 = vrot.lane.b32.xlu0 %v5491_v2, %s4799_s9 }
 0x237   : > { %948 = vrot.lane.b32.xlu1 %v5466_v17, %s4799_s9  ;;  %946 = vrot.lane.b32.xlu0 %v5495_v4, %s4799_s9 }
 0x296   : > { %v907_v59 = vpop.permute.xlu1 %906  ;;  %v897_v60 = vpop.permute.xlu0 %896 }
 0x29a   : > { %v912_v3 = vpop.permute.xlu1 %911  ;;  %v902_v61 = vpop.permute.xlu0 %901 }
 0x29e   : > { %v922_v5 = vpop.permute.xlu1 %921  ;;  %v917_v19 = vpop.permute.xlu0 %916 }
 0x2a2   : > { %v932_v14 = vpop.permute.xlu1 %931  ;;  %v927_v21 = vpop.permute.xlu0 %926 }
 0x2a6   : > { %v937_v12 = vpop.permute.xlu1 %936  ;;  %v935_v10 = vpop.permute.xlu0 %934 }
 0x2a7   : > { %v960_v8 = vsel %vm958_vm4, %v937_v12, %v902_v61   ;;  %v959_v32 = vsel %vm958_vm4, %v935_v10, %v897_v60  }
 0x2aa   : > { %v941_v23 = vpop.permute.xlu1 %940  ;;  %v939_v6 = vpop.permute.xlu0 %938 }
 0x2ab   : > { %v962_v10 = vsel %vm958_vm4, %v941_v23, %v912_v3   ;;  %v961_v23 = vsel %vm958_vm4, %v939_v6, %v907_v59  }
 0x2ae   : > { %v945_v30 = vpop.permute.xlu1 %944  ;;  %v943_v15 = vpop.permute.xlu0 %942 }
 0x2af   : > { %v964_v28 = vsel %vm958_vm4, %v945_v30, %v922_v5   ;;  %v963_v12 = vsel %vm958_vm4, %v943_v15, %v917_v19  }
 0x2b2   : > { %v949_v13 = vpop.permute.xlu1 %948  ;;  %v947_v24 = vpop.permute.xlu0 %946 }
 0x2b3   : > { %v966_v19 = vsel %vm958_vm4, %v949_v13, %v932_v14   ;;  %v965_v14 = vsel %vm958_vm4, %v947_v24, %v927_v21   ;;  %v6367_v21 = vmov %v964_v28 }
 0x2b4 PF: > { %v6368_v57 = vmov %v4408_v19  ;;  %v6369_v1 = vmov %v4412_v14  ;;  %v6370_v58 = vmov %v4416_v21  ;;  %v6371_v59 = vmov %v4420_v12  ;;  %v4436_v32 = vphi %v4404_v32, %v959_v32   ;;  %v4432_v8 = vphi %v4400_v8, %v960_v8   ;;  %v4428_v23 = vphi %v4396_v23, %v961_v23   ;;  %v4424_v10 = vphi %v4392_v10, %v962_v10   ;;  %v4420_v12 = vphi %v4388_v12, %v963_v12   ;;  %v4416_v21 = vphi %v4384_v21, %v6367_v21   ;;  %v4412_v14 = vphi %v4380_v14, %v965_v14   ;;  %v4408_v19 = vphi %v4376_v19, %v966_v19  }
 0x2b5   : > { %v6372_v60 = vmov %v4424_v10  ;;  %v6373_v3 = vmov %v4428_v23  ;;  %v6374_v61 = vmov %v4432_v8  ;;  %v6375_v5 = vmov %v4436_v32 }
 0x2b6 PF: > { %v4470_v18 = vmov %v4440_v57   ;;  %v4474_v51 = vmov %v4444_v1   ;;  %v4478_v52 = vmov %v4448_v58   ;;  %v4482_v53 = vmov %v4452_v59   ;;  %985 = sbr.rel (%p5601_p2) target bundleno = 827 (0x33b), region = 136  ;;  %s4800_s4 = smov (!%p5601_p2), 127   ;;  %v4468_v5 = vphi %v5619_v5, %v6375_v5   ;;  %v4464_v61 = vphi %v5617_v61, %v6374_v61   ;;  %v4460_v3 = vphi %v5615_v3, %v6373_v3   ;;  %v4456_v60 = vphi %v5613_v60, %v6372_v60   ;;  %v4452_v59 = vphi %v5611_v59, %v6371_v59   ;;  %v4448_v58 = vphi %v5609_v58, %v6370_v58   ;;  %v4444_v1 = vphi %v5607_v1, %v6369_v1   ;;  %v4440_v57 = vphi %v5605_v57, %v6368_v57  }
 0x2b7   : > { %v4486_v54 = vmov %v4456_v60   ;;  %v4490_v55 = vmov %v4460_v3   ;;  %v4494_v56 = vmov %v4464_v61   ;;  %v4498_v39 = vmov %v4468_v5  }
 0x2bb   : > { %998 = vrot.lane.b32.xlu1 %v5487_v0, %s4800_s4  ;;  %994 = vrot.lane.b32.xlu0 %v5483_v33, %s4800_s4  ;;  %vm1018_vm5 = vcmask 646144  }
 0x2bf   : > { %1000 = vrot.lane.b32.xlu1 %v5458_v7, %s4800_s4  ;;  %996 = vrot.lane.b32.xlu0 %v5454_v62, %s4800_s4 }
 0x2c3   : > { %1004 = vrot.lane.b32.xlu1 %v5462_v63, %s4800_s4  ;;  %1002 = vrot.lane.b32.xlu0 %v5491_v2, %s4800_s4 }
 0x2c7   : > { %1008 = vrot.lane.b32.xlu1 %v5466_v17, %s4800_s4  ;;  %1006 = vrot.lane.b32.xlu0 %v5495_v4, %s4800_s4 }
 0x32d   : > { %v999_v8 = vpop.permute.xlu1 %998  ;;  %v995_v32 = vpop.permute.xlu0 %994 }
 0x32e   : > { %v1021_v55 = vsel %vm1018_vm5, %v999_v8, %v5487_v0   ;;  %v1019_v39 = vsel %vm1018_vm5, %v995_v32, %v5483_v33  }
 0x331   : > { %v1001_v11 = vpop.permute.xlu1 %1000  ;;  %v997_v25 = vpop.permute.xlu0 %996 }
 0x332   : > { %v1022_v54 = vsel %vm1018_vm5, %v1001_v11, %v5458_v7   ;;  %v1020_v56 = vsel %vm1018_vm5, %v997_v25, %v5454_v62  }
 0x335   : > { %v1005_v9 = vpop.permute.xlu1 %1004  ;;  %v1003_v26 = vpop.permute.xlu0 %1002 }
 0x336   : > { %v1024_v52 = vsel %vm1018_vm5, %v1005_v9, %v5462_v63   ;;  %v1023_v53 = vsel %vm1018_vm5, %v1003_v26, %v5491_v2  }
 0x339   : > { %v1009_v27 = vpop.permute.xlu1 %1008  ;;  %v1007_v29 = vpop.permute.xlu0 %1006 }
 0x33a   : > { %v1026_v18 = vsel %vm1018_vm5, %v1009_v27, %v5466_v17   ;;  %v1025_v51 = vsel %vm1018_vm5, %v1007_v29, %v5495_v4  }
 0x33b PF: > { %s1847_s29 = scalar_select %p5578_p0, 1, 0  ;;  %v4500_v39 = vphi %v4498_v39, %v1019_v39   ;;  %v4496_v56 = vphi %v4494_v56, %v1020_v56   ;;  %v4492_v55 = vphi %v4490_v55, %v1021_v55   ;;  %v4488_v54 = vphi %v4486_v54, %v1022_v54   ;;  %v4484_v53 = vphi %v4482_v53, %v1023_v53   ;;  %v4480_v52 = vphi %v4478_v52, %v1024_v52   ;;  %v4476_v51 = vphi %v4474_v51, %v1025_v51   ;;  %v4472_v18 = vphi %v4470_v18, %v1026_v18   ;;  %v4532_v39 = vphi %v5596_v39, %v4500_v39   ;;  %v4528_v56 = vphi %v5594_v56, %v4496_v56   ;;  %v4524_v55 = vphi %v5592_v55, %v4492_v55   ;;  %v4520_v54 = vphi %v5590_v54, %v4488_v54   ;;  %v4516_v53 = vphi %v5588_v53, %v4484_v53   ;;  %v4512_v52 = vphi %v5586_v52, %v4480_v52   ;;  %v4508_v51 = vphi %v5584_v51, %v4476_v51   ;;  %v4504_v18 = vphi %v5582_v18, %v4472_v18  }
 0x33d   : > { %v1848_v31 = vstv %s1847_s29 }
 0x33e   : > { %vm1849_vm6 = vcmp.ne.s32.totalorder %v1848_v31, 0 }
 0x33f   : > { %v1850_v16 = vsel %vm1849_vm6, %v5483_v33, %v4532_v39   ;;  %v1854_v20 = vsel %vm1849_vm6, %v5454_v62, %v4528_v56   ;;  %v1858_v22 = vsel %vm1849_vm6, %v5487_v0, %v4524_v55   ;;  %v1862_v50 = vsel %vm1849_vm6, %v5458_v7, %v4520_v54  }
 0x340   : > { %v1866_v49 = vsel %vm1849_vm6, %v5491_v2, %v4516_v53   ;;  %v1870_v48 = vsel %vm1849_vm6, %v5462_v63, %v4512_v52   ;;  %v1874_v47 = vsel %vm1849_vm6, %v5495_v4, %v4508_v51   ;;  %v1878_v46 = vsel %vm1849_vm6, %v5466_v17, %v4504_v18  }
 0x341 PF: > { %v4566_v37 = vmov %v4536_v46   ;;  %v4570_v38 = vmov %v4540_v47   ;;  %v4574_v40 = vmov %v4544_v48   ;;  %v4578_v41 = vmov %v4548_v49   ;;  %1064 = sbr.rel (%p5557_p8) target bundleno = 966 (0x3c6), region = 144  ;;  %s4801_s7 = smov (!%p5557_p8), 1   ;;  %v4564_v16 = vphi %v5575_v16, %v1850_v16   ;;  %v4560_v20 = vphi %v5573_v20, %v1854_v20   ;;  %v4556_v22 = vphi %v5571_v22, %v1858_v22   ;;  %v4552_v50 = vphi %v5569_v50, %v1862_v50   ;;  %v4548_v49 = vphi %v5567_v49, %v1866_v49   ;;  %v4544_v48 = vphi %v5565_v48, %v1870_v48   ;;  %v4540_v47 = vphi %v5563_v47, %v1874_v47   ;;  %v4536_v46 = vphi %v5561_v46, %v1878_v46  }
 0x342   : > { %v4582_v42 = vmov %v4552_v50   ;;  %v4586_v43 = vmov %v4556_v22   ;;  %v4590_v44 = vmov %v4560_v20   ;;  %v4594_v45 = vmov %v4564_v16  }
 0x346   : > { %1077 = vrot.lane.b32.xlu1 %v5487_v0, %s4801_s7  ;;  %1073 = vrot.lane.b32.xlu0 %v5483_v33, %s4801_s7  ;;  %vm1097_vm7 = vcmask 7168  }
 0x34a   : > { %1079 = vrot.lane.b32.xlu1 %v5458_v7, %s4801_s7  ;;  %1075 = vrot.lane.b32.xlu0 %v5454_v62, %s4801_s7 }
 0x34e   : > { %1083 = vrot.lane.b32.xlu1 %v5462_v63, %s4801_s7  ;;  %1081 = vrot.lane.b32.xlu0 %v5491_v2, %s4801_s7 }
 0x352   : > { %1087 = vrot.lane.b32.xlu1 %v5466_v17, %s4801_s7  ;;  %1085 = vrot.lane.b32.xlu0 %v5495_v4, %s4801_s7 }
 0x3b8   : > { %v1078_v34 = vpop.permute.xlu1 %1077  ;;  %v1074_v35 = vpop.permute.xlu0 %1073 }
 0x3b9   : > { %v1100_v43 = vsel %vm1097_vm7, %v5487_v0, %v1078_v34   ;;  %v1098_v45 = vsel %vm1097_vm7, %v5483_v33, %v1074_v35  }
 0x3bc   : > { %v1080_v36 = vpop.permute.xlu1 %1079  ;;  %v1076_v37 = vpop.permute.xlu0 %1075 }
 0x3bd   : > { %v1101_v42 = vsel %vm1097_vm7, %v5458_v7, %v1080_v36   ;;  %v1099_v44 = vsel %vm1097_vm7, %v5454_v62, %v1076_v37  }
 0x3c0   : > { %v1084_v38 = vpop.permute.xlu1 %1083  ;;  %v1082_v40 = vpop.permute.xlu0 %1081 }
 0x3c1   : > { %v1103_v41 = vsel %vm1097_vm7, %v5462_v63, %v1084_v38   ;;  %v1102_v46 = vsel %vm1097_vm7, %v5491_v2, %v1082_v40  }
 0x3c2   : > { %v4575_v40 = vmov %v1103_v41   ;;  %v4579_v41 = vmov %v1102_v46  }
 0x3c4   : > { %v1088_v47 = vpop.permute.xlu1 %1087  ;;  %v1086_v48 = vpop.permute.xlu0 %1085 }
 0x3c5   : > { %v1105_v37 = vsel %vm1097_vm7, %v5466_v17, %v1088_v47   ;;  %v1104_v38 = vsel %vm1097_vm7, %v5495_v4, %v1086_v48  }
 0x3c6 PF: > { %1124 = sbr.rel (%p5536_p5) target bundleno = 1126 (0x466), region = 148  ;;  %s4803_s3 = smov (!%p5536_p5), 2   ;;  %v4596_v45 = vphi %v4594_v45, %v1098_v45   ;;  %v4592_v44 = vphi %v4590_v44, %v1099_v44   ;;  %v4588_v43 = vphi %v4586_v43, %v1100_v43   ;;  %v4584_v42 = vphi %v4582_v42, %v1101_v42   ;;  %v4580_v41 = vphi %v4578_v41, %v4579_v41   ;;  %v4576_v40 = vphi %v4574_v40, %v4575_v40   ;;  %v4572_v38 = vphi %v4570_v38, %v1104_v38   ;;  %v4568_v37 = vphi %v4566_v37, %v1105_v37   ;;  %v4628_v45 = vphi %v5554_v45, %v4596_v45   ;;  %v4624_v44 = vphi %v5552_v44, %v4592_v44   ;;  %v4620_v43 = vphi %v5550_v43, %v4588_v43   ;;  %v4616_v42 = vphi %v5548_v42, %v4584_v42   ;;  %v4612_v41 = vphi %v5546_v41, %v4580_v41   ;;  %v4608_v40 = vphi %v5544_v40, %v4576_v40   ;;  %v4604_v38 = vphi %v5542_v38, %v4572_v38   ;;  %v4600_v37 = vphi %v5540_v37, %v4568_v37  }
 0x3cb   : > { %v4802_v49 = vmov 0   ;;  %vm1189_vm8 = vcmask 15360  }
 0x3cc   : > { %3337 = vset.pattern.permute.xlu1 %v4802_v49  ;;  %3336 = vset.pattern.permute.xlu0 %v4802_v49 }
 0x3cd   : > { %1137 = vperm.xlu1 %3337, %v5487_v0   ;;  %1127 = vperm.xlu0 %3336, %v5483_v33  }
 0x3d1   : > { %1142 = vperm.xlu1 %3337, %v5458_v7   ;;  %1132 = vperm.xlu0 %3336, %v5454_v62  }
 0x3d5   : > { %1152 = vperm.xlu1 %3337, %v5462_v63   ;;  %1147 = vperm.xlu0 %3336, %v5491_v2  }
 0x3d9   : > { %1162 = vperm.xlu1 %3337, %v5466_v17   ;;  %1157 = vperm.xlu0 %3336, %v5495_v4  }
 0x3dd   : > { %1167 = vrot.lane.b32.xlu1 %v5454_v62, %s4803_s3  ;;  %1165 = vrot.lane.b32.xlu0 %v5483_v33, %s4803_s3 }
 0x3e1   : > { %1171 = vrot.lane.b32.xlu1 %v5458_v7, %s4803_s3  ;;  %1169 = vrot.lane.b32.xlu0 %v5487_v0, %s4803_s3 }
 0x3e5   : > { %1175 = vrot.lane.b32.xlu1 %v5462_v63, %s4803_s3  ;;  %1173 = vrot.lane.b32.xlu0 %v5491_v2, %s4803_s3 }
 0x3e9   : > { %1179 = vrot.lane.b32.xlu1 %v5466_v17, %s4803_s3  ;;  %1177 = vrot.lane.b32.xlu0 %v5495_v4, %s4803_s3 }
 0x448   : > { %v1138_v42 = vpop.permute.xlu1 %1137  ;;  %v1128_v43 = vpop.permute.xlu0 %1127 }
 0x44c   : > { %v1143_v44 = vpop.permute.xlu1 %1142  ;;  %v1133_v45 = vpop.permute.xlu0 %1132 }
 0x450   : > { %v1153_v50 = vpop.permute.xlu1 %1152  ;;  %v1148_v22 = vpop.permute.xlu0 %1147 }
 0x454   : > { %v1163_v20 = vpop.permute.xlu1 %1162  ;;  %v1158_v16 = vpop.permute.xlu0 %1157 }
 0x458   : > { %v1168_v18 = vpop.permute.xlu1 %1167  ;;  %v1166_v51 = vpop.permute.xlu0 %1165 }
 0x459   : > { %v1191_v52 = vsel %vm1189_vm8, %v1133_v45, %v1168_v18   ;;  %v1190_v45 = vsel %vm1189_vm8, %v1128_v43, %v1166_v51  }
 0x45c   : > { %v1172_v53 = vpop.permute.xlu1 %1171  ;;  %v1170_v54 = vpop.permute.xlu0 %1169 }
 0x45d   : > { %v1193_v55 = vsel %vm1189_vm8, %v1143_v44, %v1172_v53   ;;  %v1192_v43 = vsel %vm1189_vm8, %v1138_v42, %v1170_v54   ;;  %v6377_v44 = vmov %v1191_v52 }
 0x45e   : > { %v6376_v42 = vmov %v1193_v55 }
 0x460   : > { %v1176_v56 = vpop.permute.xlu1 %1175  ;;  %v1174_v39 = vpop.permute.xlu0 %1173 }
 0x461   : > { %v1195_v40 = vsel %vm1189_vm8, %v1153_v50, %v1176_v56   ;;  %v1194_v41 = vsel %vm1189_vm8, %v1148_v22, %v1174_v39  }
 0x464   : > { %v1180_v57 = vpop.permute.xlu1 %1179  ;;  %v1178_v1 = vpop.permute.xlu0 %1177 }
 0x465   : > { %v1197_v37 = vsel %vm1189_vm8, %v1163_v20, %v1180_v57   ;;  %v1196_v38 = vsel %vm1189_vm8, %v1158_v16, %v1178_v1  }
 0x466 PF: > { %v6378_v9 = vmov %v4632_v37  ;;  %v6379_v26 = vmov %v4636_v38  ;;  %v6380_v27 = vmov %v4640_v40  ;;  %v6381_v29 = vmov %v4644_v41  ;;  %v4660_v45 = vphi %v4628_v45, %v1190_v45   ;;  %v4656_v44 = vphi %v4624_v44, %v6377_v44   ;;  %v4652_v43 = vphi %v4620_v43, %v1192_v43   ;;  %v4648_v42 = vphi %v4616_v42, %v6376_v42   ;;  %v4644_v41 = vphi %v4612_v41, %v1194_v41   ;;  %v4640_v40 = vphi %v4608_v40, %v1195_v40   ;;  %v4636_v38 = vphi %v4604_v38, %v1196_v38   ;;  %v4632_v37 = vphi %v4600_v37, %v1197_v37  }
 0x467   : > { %v6382_v31 = vmov %v4648_v42  ;;  %v6383_v34 = vmov %v4652_v43  ;;  %v6384_v35 = vmov %v4656_v44  ;;  %v6385_v36 = vmov %v4660_v45 }
 0x468 PF: > { %1216 = sbr.rel (%p5515_p13) target bundleno = 1288 (0x508), region = 152  ;;  %s4805_s27 = smov (!%p5515_p13), 3   ;;  %v4692_v36 = vphi %v5533_v36, %v6385_v36   ;;  %v4688_v35 = vphi %v5531_v35, %v6384_v35   ;;  %v4684_v34 = vphi %v5529_v34, %v6383_v34   ;;  %v4680_v31 = vphi %v5527_v31, %v6382_v31   ;;  %v4676_v29 = vphi %v5525_v29, %v6381_v29   ;;  %v4672_v27 = vphi %v5523_v27, %v6380_v27   ;;  %v4668_v26 = vphi %v5521_v26, %v6379_v26   ;;  %v4664_v9 = vphi %v5519_v9, %v6378_v9  }
 0x46d   : > { %v4804_v58 = vmov 0   ;;  %vm1281_vm9 = vcmask 23552  }
 0x46e   : > { %3339 = vset.pattern.permute.xlu1 %v4804_v58  ;;  %3338 = vset.pattern.permute.xlu0 %v4804_v58 }
 0x46f   : > { %1229 = vperm.xlu1 %3339, %v5487_v0   ;;  %1219 = vperm.xlu0 %3338, %v5483_v33  }
 0x473   : > { %1234 = vperm.xlu1 %3339, %v5458_v7   ;;  %1224 = vperm.xlu0 %3338, %v5454_v62  }
 0x477   : > { %1244 = vperm.xlu1 %3339, %v5462_v63   ;;  %1239 = vperm.xlu0 %3338, %v5491_v2  }
 0x47b   : > { %1254 = vperm.xlu1 %3339, %v5466_v17   ;;  %1249 = vperm.xlu0 %3338, %v5495_v4  }
 0x47f   : > { %1259 = vrot.lane.b32.xlu1 %v5454_v62, %s4805_s27  ;;  %1257 = vrot.lane.b32.xlu0 %v5483_v33, %s4805_s27 }
 0x483   : > { %1263 = vrot.lane.b32.xlu1 %v5458_v7, %s4805_s27  ;;  %1261 = vrot.lane.b32.xlu0 %v5487_v0, %s4805_s27 }
 0x487   : > { %1267 = vrot.lane.b32.xlu1 %v5462_v63, %s4805_s27  ;;  %1265 = vrot.lane.b32.xlu0 %v5491_v2, %s4805_s27 }
 0x48b   : > { %1271 = vrot.lane.b32.xlu1 %v5466_v17, %s4805_s27  ;;  %1269 = vrot.lane.b32.xlu0 %v5495_v4, %s4805_s27 }
 0x4ea   : > { %v1230_v59 = vpop.permute.xlu1 %1229  ;;  %v1220_v60 = vpop.permute.xlu0 %1219 }
 0x4ee   : > { %v1235_v3 = vpop.permute.xlu1 %1234  ;;  %v1225_v61 = vpop.permute.xlu0 %1224 }
 0x4f2   : > { %v1245_v5 = vpop.permute.xlu1 %1244  ;;  %v1240_v19 = vpop.permute.xlu0 %1239 }
 0x4f6   : > { %v1255_v14 = vpop.permute.xlu1 %1254  ;;  %v1250_v21 = vpop.permute.xlu0 %1249 }
 0x4fa   : > { %v1260_v12 = vpop.permute.xlu1 %1259  ;;  %v1258_v10 = vpop.permute.xlu0 %1257 }
 0x4fb   : > { %v1283_v35 = vsel %vm1281_vm9, %v1225_v61, %v1260_v12   ;;  %v1282_v36 = vsel %vm1281_vm9, %v1220_v60, %v1258_v10  }
 0x4fe   : > { %v1264_v23 = vpop.permute.xlu1 %1263  ;;  %v1262_v6 = vpop.permute.xlu0 %1261 }
 0x4ff   : > { %v1285_v31 = vsel %vm1281_vm9, %v1235_v3, %v1264_v23   ;;  %v1284_v34 = vsel %vm1281_vm9, %v1230_v59, %v1262_v6  }
 0x502   : > { %v1268_v30 = vpop.permute.xlu1 %1267  ;;  %v1266_v15 = vpop.permute.xlu0 %1265 }
 0x503   : > { %v1287_v27 = vsel %vm1281_vm9, %v1245_v5, %v1268_v30   ;;  %v1286_v29 = vsel %vm1281_vm9, %v1240_v19, %v1266_v15  }
 0x506   : > { %v1272_v28 = vpop.permute.xlu1 %1271  ;;  %v1270_v13 = vpop.permute.xlu0 %1269 }
 0x507   : > { %v1289_v9 = vsel %vm1281_vm9, %v1255_v14, %v1272_v28   ;;  %v1288_v26 = vsel %vm1281_vm9, %v1250_v21, %v1270_v13  }
 0x508 PF: > { %v6386_v6 = vmov %v4696_v9  ;;  %v6387_v30 = vmov %v4700_v26  ;;  %v6388_v15 = vmov %v4704_v27  ;;  %v6389_v28 = vmov %v4708_v29  ;;  %v4724_v36 = vphi %v4692_v36, %v1282_v36   ;;  %v4720_v35 = vphi %v4688_v35, %v1283_v35   ;;  %v4716_v34 = vphi %v4684_v34, %v1284_v34   ;;  %v4712_v31 = vphi %v4680_v31, %v1285_v31   ;;  %v4708_v29 = vphi %v4676_v29, %v1286_v29   ;;  %v4704_v27 = vphi %v4672_v27, %v1287_v27   ;;  %v4700_v26 = vphi %v4668_v26, %v1288_v26   ;;  %v4696_v9 = vphi %v4664_v9, %v1289_v9  }
 0x509   : > { %v6390_v13 = vmov %v4712_v31  ;;  %v6391_v24 = vmov %v4716_v34  ;;  %v6392_v11 = vmov %v4720_v35  ;;  %v6393_v25 = vmov %v4724_v36 }
 0x50a PF: > { %1308 = sbr.rel (%p679_p11) target bundleno = 1450 (0x5aa), region = 156  ;;  %s4807_s6 = smov (!%p679_p11), 4   ;;  %v4756_v25 = vphi %v5512_v25, %v6393_v25   ;;  %v4752_v11 = vphi %v5510_v11, %v6392_v11   ;;  %v4748_v24 = vphi %v5508_v24, %v6391_v24   ;;  %v4744_v13 = vphi %v5506_v13, %v6390_v13   ;;  %v4740_v28 = vphi %v5504_v28, %v6389_v28   ;;  %v4736_v15 = vphi %v5502_v15, %v6388_v15   ;;  %v4732_v30 = vphi %v5500_v30, %v6387_v30   ;;  %v4728_v6 = vphi %v5498_v6, %v6386_v6  }
 0x50f   : > { %v4806_v8 = vmov 0   ;;  %vm1373_vm10 = vcmask 31744  }
 0x510   : > { %3341 = vset.pattern.permute.xlu1 %v4806_v8  ;;  %3340 = vset.pattern.permute.xlu0 %v4806_v8 }
 0x511   : > { %1321 = vperm.xlu1 %3341, %v5487_v0   ;;  %1311 = vperm.xlu0 %3340, %v5483_v33  }
 0x515   : > { %1326 = vperm.xlu1 %3341, %v5458_v7   ;;  %1316 = vperm.xlu0 %3340, %v5454_v62  }
 0x519   : > { %1336 = vperm.xlu1 %3341, %v5462_v63   ;;  %1331 = vperm.xlu0 %3340, %v5491_v2  }
 0x51d   : > { %1346 = vperm.xlu1 %3341, %v5466_v17   ;;  %1341 = vperm.xlu0 %3340, %v5495_v4  }
 0x521   : > { %1351 = vrot.lane.b32.xlu1 %v5454_v62, %s4807_s6  ;;  %1349 = vrot.lane.b32.xlu0 %v5483_v33, %s4807_s6 }
 0x525   : > { %1355 = vrot.lane.b32.xlu1 %v5458_v7, %s4807_s6  ;;  %1353 = vrot.lane.b32.xlu0 %v5487_v0, %s4807_s6 }
 0x529   : > { %1359 = vrot.lane.b32.xlu1 %v5462_v63, %s4807_s6  ;;  %1357 = vrot.lane.b32.xlu0 %v5491_v2, %s4807_s6 }
 0x52d   : > { %1363 = vrot.lane.b32.xlu1 %v5466_v17, %s4807_s6  ;;  %1361 = vrot.lane.b32.xlu0 %v5495_v4, %s4807_s6 }
 0x58c   : > { %v1322_v24 = vpop.permute.xlu1 %1321  ;;  %v1312_v32 = vpop.permute.xlu0 %1311 }
 0x590   : > { %v1327_v11 = vpop.permute.xlu1 %1326  ;;  %v1317_v25 = vpop.permute.xlu0 %1316 }
 0x594   : > { %v1337_v9 = vpop.permute.xlu1 %1336  ;;  %v1332_v62 = vpop.permute.xlu0 %1331 }
 0x598   : > { %v1347_v26 = vpop.permute.xlu1 %1346  ;;  %v1342_v33 = vpop.permute.xlu0 %1341 }
 0x59c   : > { %v1352_v7 = vpop.permute.xlu1 %1351  ;;  %v1350_v27 = vpop.permute.xlu0 %1349 }
 0x59d   : > { %v1375_v0 = vsel %vm1373_vm10, %v1317_v25, %v1352_v7   ;;  %v1374_v25 = vsel %vm1373_vm10, %v1312_v32, %v1350_v27  }
 0x5a0   : > { %v1356_v63 = vpop.permute.xlu1 %1355  ;;  %v1354_v2 = vpop.permute.xlu0 %1353 }
 0x5a1   : > { %v1377_v13 = vsel %vm1373_vm10, %v1327_v11, %v1356_v63   ;;  %v1376_v24 = vsel %vm1373_vm10, %v1322_v24, %v1354_v2   ;;  %v6394_v11 = vmov %v1375_v0 }
 0x5a4   : > { %v1360_v17 = vpop.permute.xlu1 %1359  ;;  %v1358_v4 = vpop.permute.xlu0 %1357 }
 0x5a5   : > { %v1379_v15 = vsel %vm1373_vm10, %v1337_v9, %v1360_v17   ;;  %v1378_v28 = vsel %vm1373_vm10, %v1332_v62, %v1358_v4  }
 0x5a8   : > { %v1364_v29 = vpop.permute.xlu1 %1363  ;;  %v1362_v31 = vpop.permute.xlu0 %1361 }
 0x5a9   : > { %v1381_v6 = vsel %vm1373_vm10, %v1347_v26, %v1364_v29   ;;  %v1380_v30 = vsel %vm1373_vm10, %v1342_v33, %v1362_v31  }
 0x5aa PF: > { %vm1390_vm11 = vcmask 654336   ;;  %s1546_s30 = sshll.u32 %s4850_s0, 10  ;;  %s1413_s16 = sshll.u32 %s4955_s22, 4  ;;  %v4788_v25 = vphi %v4756_v25, %v1374_v25   ;;  %v4784_v11 = vphi %v4752_v11, %v6394_v11   ;;  %v4780_v24 = vphi %v4748_v24, %v1376_v24   ;;  %v4776_v13 = vphi %v4744_v13, %v1377_v13   ;;  %v4772_v28 = vphi %v4740_v28, %v1378_v28   ;;  %v4768_v15 = vphi %v4736_v15, %v1379_v15   ;;  %v4764_v30 = vphi %v4732_v30, %v1380_v30   ;;  %v4760_v6 = vphi %v4728_v6, %v1381_v6   ;;  %s6286_s16 = int_to_ptr.vmem [resolvable:$true] %s1413_s16 }
 0x5ab   : > { %1391 = vst.msk [vmem:[%s4955_s22] sm:$0xff] %vm1390_vm11, %v4788_v25  ;;  %1392 = vst.msk [vmem:[%s4955_s22 + $0x8] sm:$0xff] %vm1390_vm11, %v4784_v11  ;;  %s6283_s10 = scalar_lea.hbm %s6331_s2, %s1546_s30  ;;  %s1400_s0 = scalar_lea.sflag [#allocation6], %s4926_s28 }
 0x5ac   : > { %1393 = vst.msk [vmem:[%s4955_s22 + $0x10] sm:$0xff] %vm1390_vm11, %v4780_v24  ;;  %1394 = vst.msk [vmem:[%s4955_s22 + $0x18] sm:$0xff] %vm1390_vm11, %v4776_v13  ;;  %s3378_s19 = scalar_lea.vmem %s6286_s16, 1024  ;;  %p6395_p13 = scmp.ne.s32.totalorder %s6336_s23, 0 }
 0x5ad   : > { %1395 = vst.msk [vmem:[%s4955_s22 + $0x20] sm:$0xff] %vm1390_vm11, %v4772_v28  ;;  %1396 = vst.msk [vmem:[%s4955_s22 + $0x28] sm:$0xff] %vm1390_vm11, %v4768_v15  ;;  %p3379_p11 = scmp.ne.s32.totalorder %s6286_s16, %s3378_s19  ;;  %s4808_s25 = smov [#allocation7]  }
 0x5ae   : > { %1397 = vst.msk [vmem:[%s4955_s22 + $0x30] sm:$0xff] %vm1390_vm11, %v4764_v30  ;;  %1398 = vst.msk [vmem:[%s4955_s22 + $0x38] sm:$0xff] %vm1390_vm11, %v4760_v6  ;;  %s3382_s26 = sshll.u32 %s4808_s25, 4  ;;  %s3383_s26 = int_to_ptr.vmem [resolvable:$false] %s3382_s26 }
 0x5af   : > { %p3380_p4 = pnand %p3379_p11, %p6395_p13  ;;  %s3384_s21 = scalar_lea.vmem %s3383_s26, 2048 }
 0x5b0   : > { %p3385_p7 = scmp.lt.s32.totalorder %s6286_s16, %s3383_s26  ;;  %p3386_p8 = scmp.lt.s32.totalorder %s3384_s21, %s3378_s19 }
 0x5b1   : > { %p3381_p5 = pneg %p3380_p4 }
 0x5b2   : > { %p3387_p10 = por %p3386_p8, %p3385_p7 }
 0x5b4   : > { %p3388_p0 = pnand %p3387_p10, %p3381_p5 }
 0x5b6   : > { %3391 = shalt.err (!%p3388_p0)
}
 0x5b7   : > { %s3392_s22 = scalar_lea.hbm %s6283_s10, 1024  ;;  %s3396_s9 = scalar_lea.hbm %s6331_s2, 2048 }
 0x5b8   : > { %p3393_p2 = scmp.ne.s32.totalorder %s6283_s10, %s3392_s22  ;;  %p3397_p3 = scmp.lt.s32.totalorder %s6283_s10, %s6331_s2 }
 0x5b9   : > { %p3398_p6 = scmp.lt.s32.totalorder %s3396_s9, %s3392_s22 }
 0x5ba   : > { %p3394_p9 = pnand %p3393_p2, %p6395_p13 }
 0x5bb   : > { %p3399_p12 = por %p3398_p6, %p3397_p3 }
 0x5bc   : > { %p3395_p1 = pneg %p3394_p9 }
 0x5be   : > { %p3400_p11 = pnand %p3399_p12, %p3395_p1 }
 0x5c0   : > { %3403 = shalt.err (!%p3400_p11)
}
 0x5c1   : > { %s4809_s7 = smov 128   ;;  %s4810_s3 = smov 8  }
 0x5c2   : > { %1879 = dma.vmem_to_hbm [thread:$0]  (%p6395_p13), %s6286_s16, 1024, %s6283_s10, %s1400_s0, %s4809_s7, %s4809_s7, %s4810_s3  }
 0x5c3 PF: > { %s1428_s27 = sand.u32 1, %s4104_s12   ;;  %p6396_p4 = scmp.ne.s32.totalorder %s6337_s24, 0 }
 0x5c4   : > { %p6397_p5 = scmp.ge.s32.totalorder %s4116_s15, 2  ;;  %s1429_s6 = scalar_lea.sflag [#allocation6], %s1428_s27 }
 0x5c6   : > { %p1919_p7 = pnand %p6397_p5, %p6396_p4 }
 0x5c8   : > { %p1920_p8 = pneg %p1919_p7 }
 0x5ca   : > { %4099 = dma.done.wait (%p1920_p8), %s1429_s6, 1024  }
 0x5cb   : > { %4101 = vsyncadd (%p1920_p8), %s1429_s6, 4294966272  ;;  %p19_p10 = scmp.ge.s32.totalorder %s4854_s17, 4   ;;  %s6398_s12 = smov %s4108_s13 }
 0x5cc   : > { %s6399_s13 = smov %s4112_s14  ;;  %s6400_s14 = smov %s4866_s20 }
 0x5cd   : > { %s6401_s15 = smov %s4854_s17  ;;  %21 = sbr.rel (!%p19_p10) target bundleno = 10 (0xa), region = 197 }
 0x5d2   :  { %1434 = vsyncpa [#allocation5], 1 }
 0x5d3   :  { %1436 = vsyncpa [#allocation5 + $0x1], 1 }
 0x5d4   :  { %1437 = vsyncpa [#allocation6], 1 }
 0x5d5   :  { %1439 = vsyncpa [#allocation6 + $0x1], 1 }

</bundles_post_ra>
